<compile_context>
chip_gen: v7x
topology: tpu7x:2x2x1
jax: 0.10.0
libtpu: 0.0.40
codegen_flags: <defaults>
</compile_context>

<pallas_src>
import math
import jax
import jax.numpy as jnp
from jax.experimental import pallas as pl
from jax.experimental.pallas import tpu as pltpu

# ----------------------- problem sizes (small, consistent with module) ------
N_LETTERS = 57          # len(string.ascii_letters + " .,;'")
HIDDEN    = 32          # n_hidden (scaled down from 128 for a small test)
N_LAYERS  = 2
N_CATE    = 8           # output classes (n_cate; original script left it empty)
BATCH     = 2
SEQ       = 8
PAD_OUT   = 128         # lane-dense classifier width (real Out columns sliced after)


# ----------------------------- Pallas kernel --------------------------------
def _make_lstm_kernel(T, B, H):
    """Kernel factory; T, B, H are static Python ints baked into the trace."""

    def kernel(x_ref,                       # (T*B, In)  time-major, flattened
               wih0_ref, whh0_ref, b0_ref,  # (In,4H), (H,4H), (1,4H)
               w1_ref, b1_ref,              # (2H,4H) = [wih1; whh1], (1,4H)
               wout_ref, bout_ref,          # (H,PAD_OUT), (1,PAD_OUT)
               out_ref):                    # (B, PAD_OUT)
        # ---- hoisted layer-0 input projection: one big GEMM off the serial
        #      recurrent path; the combined bias is folded in here too.
        xw = jnp.dot(x_ref[...], wih0_ref[...],
                     preferred_element_type=jnp.float32) + b0_ref[...]   # (T*B, 4H)

        whh0 = whh0_ref[...]
        w1 = w1_ref[...]
        b1 = b1_ref[...]

        def gates(z):
            # 2 full-vreg EUP pushes per cell instead of 4 sub-vreg ones.
            sg = jax.nn.sigmoid(z)
            th = jnp.tanh(z)
            i = sg[:, 0 * H:1 * H]           # PyTorch gate order: i, f, g, o
            f = sg[:, 1 * H:2 * H]
            g = th[:, 2 * H:3 * H]
            o = sg[:, 3 * H:4 * H]
            return i, f, g, o

        zero = jnp.zeros((B, H), jnp.float32)
        h0, c0, h1, c1 = zero, zero, zero, zero

        # Fully unrolled time loop (T is small & static).
        for t in range(T):
            # ----- layer 0: single (B,H)@(H,4H) push on the recurrent path
            z0 = xw[t * B:(t + 1) * B, :] + jnp.dot(
                h0, whh0, preferred_element_type=jnp.float32)
            i0, f0, g0, o0 = gates(z0)
            c0 = f0 * c0 + i0 * g0
            h0 = o0 * jnp.tanh(c0)

            # ----- layer 1: fused [x|h] weights -> single (B,2H)@(2H,4H) push
            hc = jnp.concatenate([h0, h1], axis=1)
            z1 = jnp.dot(hc, w1, preferred_element_type=jnp.float32) + b1
            i1, f1, g1, o1 = gates(z1)
            c1 = f1 * c1 + i1 * g1
            h1 = o1 * jnp.tanh(c1)

        # ----- classifier on last step + LogSoftmax(dim=1).
        # Lane-padded to 128 columns; padded columns carry a -1e30 bias so they
        # contribute ~0 to the LSE and are sliced off in the wrapper.
        logits = jnp.dot(h1, wout_ref[...],
                         preferred_element_type=jnp.float32) + bout_ref[...]
        m = jnp.max(logits, axis=1, keepdims=True)
        lse = jnp.log(jnp.sum(jnp.exp(logits - m), axis=1, keepdims=True)) + m
        out_ref[...] = logits - lse

    return kernel


def rnn_forward(x, kp):
    """x: (B, T, In) float32 (batch_first, like PyTorch). Returns (B, Out) log-probs."""
    B, T, In = x.shape
    H = kp["whh0"].shape[0]
    Out = kp["n_out"]

    # Pad batch to a full f32 sublane tile (8 rows): same cycles, no partial tiles.
    B_pad = max(8, ((B + 7) // 8) * 8)
    if B_pad != B:
        x = jnp.pad(x, ((0, B_pad - B), (0, 0), (0, 0)))

    # Layout plumbing (time-major + flatten) host-side; kernel consumes one slab.
    x_tm = jnp.transpose(x, (1, 0, 2)).reshape(T * B_pad, In)

    vmem = pl.BlockSpec(memory_space=pltpu.MemorySpace.VMEM)
    args = (x_tm,
            kp["wih0"], kp["whh0"], kp["b0"],
            kp["w1"], kp["b1"],
            kp["wout"], kp["bout"])

    out_pad = pl.pallas_call(
        _make_lstm_kernel(T, B_pad, H),
        out_shape=jax.ShapeDtypeStruct((B_pad, PAD_OUT), jnp.float32),
        in_specs=[vmem] * len(args),
        out_specs=vmem,
    )(*args)
    return out_pad[:B, :Out]


# ----------------------------- parameter setup (glue) -----------------------
def init_params(key, input_size, hidden_size, output_size):
    """Raw PyTorch-shaped params with uniform(-1/sqrt(H), 1/sqrt(H)) init."""
    k = 1.0 / math.sqrt(hidden_size)
    keys = jax.random.split(key, 10)
    u = lambda kk, shape: jax.random.uniform(kk, shape, jnp.float32,
                                             minval=-k, maxval=k)
    H4 = 4 * hidden_size
    return {
        "w_ih0": u(keys[0], (H4, input_size)),
        "w_hh0": u(keys[1], (H4, hidden_size)),
        "b_ih0": u(keys[2], (H4,)), "b_hh0": u(keys[3], (H4,)),
        "w_ih1": u(keys[4], (H4, hidden_size)),
        "w_hh1": u(keys[5], (H4, hidden_size)),
        "b_ih1": u(keys[6], (H4,)), "b_hh1": u(keys[7], (H4,)),
        "w_out": u(keys[8], (output_size, hidden_size)),
        "b_out": u(keys[9], (output_size,)),
    }


def pack_params(raw, hidden_size, output_size, pad_out=PAD_OUT):
    """Kernel-layout params: transposed, layer-1 weights stacked, classifier lane-padded."""
    wout = jnp.zeros((hidden_size, pad_out), jnp.float32)
    wout = wout.at[:, :output_size].set(raw["w_out"].T)
    bout = jnp.full((1, pad_out), -1e30, jnp.float32)
    bout = bout.at[0, :output_size].set(raw["b_out"])
    return {
        "wih0": raw["w_ih0"].T,                                     # (In, 4H)
        "whh0": raw["w_hh0"].T,                                     # (H, 4H)
        "b0": (raw["b_ih0"] + raw["b_hh0"])[None, :],               # (1, 4H)
        "w1": jnp.concatenate([raw["w_ih1"].T, raw["w_hh1"].T], 0), # (2H, 4H)
        "b1": (raw["b_ih1"] + raw["b_hh1"])[None, :],               # (1, 4H)
        "wout": wout,                                               # (H, 128)
        "bout": bout,                                               # (1, 128)
        "n_out": output_size,
    }


# ----------------------------- pure-JAX reference ---------------------------
def rnn_reference(x, raw):
    B, T, In = x.shape
    H = raw["w_hh0"].shape[1]

    def cell(x_t, h, c, w_ih, w_hh, b_ih, b_hh):
        z = x_t @ w_ih.T + h @ w_hh.T + b_ih + b_hh
        i = jax.nn.sigmoid(z[:, 0 * H:1 * H])
        f = jax.nn.sigmoid(z[:, 1 * H:2 * H])
        g = jnp.tanh(z[:, 2 * H:3 * H])
        o = jax.nn.sigmoid(z[:, 3 * H:4 * H])
        c = f * c + i * g
        h = o * jnp.tanh(c)
        return h, c

    h0 = c0 = h1 = c1 = jnp.zeros((B, H), jnp.float32)
    for t in range(T):
        h0, c0 = cell(x[:, t, :], h0, c0,
                      raw["w_ih0"], raw["w_hh0"], raw["b_ih0"], raw["b_hh0"])
        h1, c1 = cell(h0, h1, c1,
                      raw["w_ih1"], raw["w_hh1"], raw["b_ih1"], raw["b_hh1"])
    logits = h1 @ raw["w_out"].T + raw["b_out"]
    return jax.nn.log_softmax(logits, axis=1)


# ----------------------------------- main ------------------------------------
if __name__ == "__main__":
    key = jax.random.PRNGKey(0)
    k_par, k_idx = jax.random.split(key)

    raw = init_params(k_par, N_LETTERS, HIDDEN, N_CATE)
    kp = pack_params(raw, HIDDEN, N_CATE)

    # one-hot "name" tensors, like names2tensor(): (B, T, n_letters)
    letter_ids = jax.random.randint(k_idx, (BATCH, SEQ), 0, N_LETTERS)
    x = jax.nn.one_hot(letter_ids, N_LETTERS, dtype=jnp.float32)

    out = rnn_forward(x, kp)
    out = jax.block_until_ready(out)

    ref = rnn_reference(x, raw)
    assert out.shape == (BATCH, N_CATE)
    assert jnp.allclose(out, ref, atol=2e-5, rtol=2e-5), "mismatch vs JAX reference"

    print("KERNEL_OK")
</pallas_src>

<mosaic_0001>
module attributes {stable_mosaic.version = 11 : i64} {
  func.func @kernel(%arg0: memref<64x57xf32, #tpu.memory_space<vmem>>, %arg1: memref<57x128xf32, #tpu.memory_space<vmem>>, %arg2: memref<32x128xf32, #tpu.memory_space<vmem>>, %arg3: memref<1x128xf32, #tpu.memory_space<vmem>>, %arg4: memref<64x128xf32, #tpu.memory_space<vmem>>, %arg5: memref<1x128xf32, #tpu.memory_space<vmem>>, %arg6: memref<32x128xf32, #tpu.memory_space<vmem>>, %arg7: memref<1x128xf32, #tpu.memory_space<vmem>>, %arg8: memref<8x128xf32, #tpu.memory_space<vmem>>) attributes {dimension_semantics = [], scalar_prefetch = 0 : i64, scratch_operands = 0 : i64, tpu.core_type = #tpu.core_type<tc>} {
    %c0 = arith.constant 0 : index
    %c0_0 = arith.constant 0 : index
    %0 = vector.load %arg0[%c0, %c0_0] : memref<64x57xf32, #tpu.memory_space<vmem>>, vector<64x57xf32>
    %c0_1 = arith.constant 0 : index
    %c0_2 = arith.constant 0 : index
    %1 = vector.load %arg1[%c0_1, %c0_2] : memref<57x128xf32, #tpu.memory_space<vmem>>, vector<57x128xf32>
    %cst = arith.constant dense<0.000000e+00> : vector<64x128xf32>
    %2 = tpu.matmul %0, %1, %cst {dimension_numbers = #tpu.dot_dimension_numbers<[1], [0], [0], [1], [0, 0, 1, 1], [], []>} : vector<64x57xf32>, vector<57x128xf32>, vector<64x128xf32> -> vector<64x128xf32>
    %c0_3 = arith.constant 0 : index
    %c0_4 = arith.constant 0 : index
    %3 = vector.load %arg3[%c0_3, %c0_4] : memref<1x128xf32, #tpu.memory_space<vmem>>, vector<1x128xf32>
    %4 = vector.broadcast %3 : vector<1x128xf32> to vector<64x128xf32>
    %5 = arith.addf %2, %4 : vector<64x128xf32>
    %c0_5 = arith.constant 0 : index
    %c0_6 = arith.constant 0 : index
    %6 = vector.load %arg2[%c0_5, %c0_6] : memref<32x128xf32, #tpu.memory_space<vmem>>, vector<32x128xf32>
    %c0_7 = arith.constant 0 : index
    %c0_8 = arith.constant 0 : index
    %7 = vector.load %arg4[%c0_7, %c0_8] : memref<64x128xf32, #tpu.memory_space<vmem>>, vector<64x128xf32>
    %c0_9 = arith.constant 0 : index
    %c0_10 = arith.constant 0 : index
    %8 = vector.load %arg5[%c0_9, %c0_10] : memref<1x128xf32, #tpu.memory_space<vmem>>, vector<1x128xf32>
    %cst_11 = arith.constant 0.000000e+00 : f32
    %9 = vector.broadcast %cst_11 : f32 to vector<8x32xf32>
    %10 = vector.extract_strided_slice %5 {offsets = [0, 0], sizes = [8, 128], strides = [1, 1]} : vector<64x128xf32> to vector<8x128xf32>
    %cst_12 = arith.constant dense<0.000000e+00> : vector<8x128xf32>
    %11 = tpu.matmul %9, %6, %cst_12 {dimension_numbers = #tpu.dot_dimension_numbers<[1], [0], [0], [1], [0, 0, 1, 1], [], []>} : vector<8x32xf32>, vector<32x128xf32>, vector<8x128xf32> -> vector<8x128xf32>
    %12 = arith.addf %10, %11 : vector<8x128xf32>
    %13 = arith.negf %12 : vector<8x128xf32>
    %14 = math.exp %13 : vector<8x128xf32>
    %cst_13 = arith.constant 1.000000e+00 : f32
    %15 = vector.broadcast %cst_13 : f32 to vector<8x128xf32>
    %16 = arith.addf %15, %14 : vector<8x128xf32>
    %17 = arith.divf %15, %16 : vector<8x128xf32>
    %18 = math.tanh %12 : vector<8x128xf32>
    %19 = vector.extract_strided_slice %17 {offsets = [0, 0], sizes = [8, 32], strides = [1, 1]} : vector<8x128xf32> to vector<8x32xf32>
    %20 = vector.extract_strided_slice %17 {offsets = [0, 32], sizes = [8, 32], strides = [1, 1]} : vector<8x128xf32> to vector<8x32xf32>
    %21 = vector.extract_strided_slice %18 {offsets = [0, 64], sizes = [8, 32], strides = [1, 1]} : vector<8x128xf32> to vector<8x32xf32>
    %22 = vector.extract_strided_slice %17 {offsets = [0, 96], sizes = [8, 32], strides = [1, 1]} : vector<8x128xf32> to vector<8x32xf32>
    %23 = arith.mulf %20, %9 : vector<8x32xf32>
    %24 = arith.mulf %19, %21 : vector<8x32xf32>
    %25 = arith.addf %23, %24 : vector<8x32xf32>
    %26 = math.tanh %25 : vector<8x32xf32>
    %27 = arith.mulf %22, %26 : vector<8x32xf32>
    %28 = tpu.concatenate %27, %9 in 1 : vector<8x32xf32>, vector<8x32xf32> -> vector<8x64xf32>
    %cst_14 = arith.constant dense<0.000000e+00> : vector<8x128xf32>
    %29 = tpu.matmul %28, %7, %cst_14 {dimension_numbers = #tpu.dot_dimension_numbers<[1], [0], [0], [1], [0, 0, 1, 1], [], []>} : vector<8x64xf32>, vector<64x128xf32>, vector<8x128xf32> -> vector<8x128xf32>
    %30 = vector.broadcast %8 : vector<1x128xf32> to vector<8x128xf32>
    %31 = arith.addf %29, %30 : vector<8x128xf32>
    %32 = arith.negf %31 : vector<8x128xf32>
    %33 = math.exp %32 : vector<8x128xf32>
    %cst_15 = arith.constant 1.000000e+00 : f32
    %34 = vector.broadcast %cst_15 : f32 to vector<8x128xf32>
    %35 = arith.addf %34, %33 : vector<8x128xf32>
    %36 = arith.divf %34, %35 : vector<8x128xf32>
    %37 = math.tanh %31 : vector<8x128xf32>
    %38 = vector.extract_strided_slice %36 {offsets = [0, 0], sizes = [8, 32], strides = [1, 1]} : vector<8x128xf32> to vector<8x32xf32>
    %39 = vector.extract_strided_slice %36 {offsets = [0, 32], sizes = [8, 32], strides = [1, 1]} : vector<8x128xf32> to vector<8x32xf32>
    %40 = vector.extract_strided_slice %37 {offsets = [0, 64], sizes = [8, 32], strides = [1, 1]} : vector<8x128xf32> to vector<8x32xf32>
    %41 = vector.extract_strided_slice %36 {offsets = [0, 96], sizes = [8, 32], strides = [1, 1]} : vector<8x128xf32> to vector<8x32xf32>
    %42 = arith.mulf %39, %9 : vector<8x32xf32>
    %43 = arith.mulf %38, %40 : vector<8x32xf32>
    %44 = arith.addf %42, %43 : vector<8x32xf32>
    %45 = math.tanh %44 : vector<8x32xf32>
    %46 = arith.mulf %41, %45 : vector<8x32xf32>
    %47 = vector.extract_strided_slice %5 {offsets = [8, 0], sizes = [8, 128], strides = [1, 1]} : vector<64x128xf32> to vector<8x128xf32>
    %cst_16 = arith.constant dense<0.000000e+00> : vector<8x128xf32>
    %48 = tpu.matmul %27, %6, %cst_16 {dimension_numbers = #tpu.dot_dimension_numbers<[1], [0], [0], [1], [0, 0, 1, 1], [], []>} : vector<8x32xf32>, vector<32x128xf32>, vector<8x128xf32> -> vector<8x128xf32>
    %49 = arith.addf %47, %48 : vector<8x128xf32>
    %50 = arith.negf %49 : vector<8x128xf32>
    %51 = math.exp %50 : vector<8x128xf32>
    %cst_17 = arith.constant 1.000000e+00 : f32
    %52 = vector.broadcast %cst_17 : f32 to vector<8x128xf32>
    %53 = arith.addf %52, %51 : vector<8x128xf32>
    %54 = arith.divf %52, %53 : vector<8x128xf32>
    %55 = math.tanh %49 : vector<8x128xf32>
    %56 = vector.extract_strided_slice %54 {offsets = [0, 0], sizes = [8, 32], strides = [1, 1]} : vector<8x128xf32> to vector<8x32xf32>
    %57 = vector.extract_strided_slice %54 {offsets = [0, 32], sizes = [8, 32], strides = [1, 1]} : vector<8x128xf32> to vector<8x32xf32>
    %58 = vector.extract_strided_slice %55 {offsets = [0, 64], sizes = [8, 32], strides = [1, 1]} : vector<8x128xf32> to vector<8x32xf32>
    %59 = vector.extract_strided_slice %54 {offsets = [0, 96], sizes = [8, 32], strides = [1, 1]} : vector<8x128xf32> to vector<8x32xf32>
    %60 = arith.mulf %57, %25 : vector<8x32xf32>
    %61 = arith.mulf %56, %58 : vector<8x32xf32>
    %62 = arith.addf %60, %61 : vector<8x32xf32>
    %63 = math.tanh %62 : vector<8x32xf32>
    %64 = arith.mulf %59, %63 : vector<8x32xf32>
    %65 = tpu.concatenate %64, %46 in 1 : vector<8x32xf32>, vector<8x32xf32> -> vector<8x64xf32>
    %cst_18 = arith.constant dense<0.000000e+00> : vector<8x128xf32>
    %66 = tpu.matmul %65, %7, %cst_18 {dimension_numbers = #tpu.dot_dimension_numbers<[1], [0], [0], [1], [0, 0, 1, 1], [], []>} : vector<8x64xf32>, vector<64x128xf32>, vector<8x128xf32> -> vector<8x128xf32>
    %67 = vector.broadcast %8 : vector<1x128xf32> to vector<8x128xf32>
    %68 = arith.addf %66, %67 : vector<8x128xf32>
    %69 = arith.negf %68 : vector<8x128xf32>
    %70 = math.exp %69 : vector<8x128xf32>
    %cst_19 = arith.constant 1.000000e+00 : f32
    %71 = vector.broadcast %cst_19 : f32 to vector<8x128xf32>
    %72 = arith.addf %71, %70 : vector<8x128xf32>
    %73 = arith.divf %71, %72 : vector<8x128xf32>
    %74 = math.tanh %68 : vector<8x128xf32>
    %75 = vector.extract_strided_slice %73 {offsets = [0, 0], sizes = [8, 32], strides = [1, 1]} : vector<8x128xf32> to vector<8x32xf32>
    %76 = vector.extract_strided_slice %73 {offsets = [0, 32], sizes = [8, 32], strides = [1, 1]} : vector<8x128xf32> to vector<8x32xf32>
    %77 = vector.extract_strided_slice %74 {offsets = [0, 64], sizes = [8, 32], strides = [1, 1]} : vector<8x128xf32> to vector<8x32xf32>
    %78 = vector.extract_strided_slice %73 {offsets = [0, 96], sizes = [8, 32], strides = [1, 1]} : vector<8x128xf32> to vector<8x32xf32>
    %79 = arith.mulf %76, %44 : vector<8x32xf32>
    %80 = arith.mulf %75, %77 : vector<8x32xf32>
    %81 = arith.addf %79, %80 : vector<8x32xf32>
    %82 = math.tanh %81 : vector<8x32xf32>
    %83 = arith.mulf %78, %82 : vector<8x32xf32>
    %84 = vector.extract_strided_slice %5 {offsets = [16, 0], sizes = [8, 128], strides = [1, 1]} : vector<64x128xf32> to vector<8x128xf32>
    %cst_20 = arith.constant dense<0.000000e+00> : vector<8x128xf32>
    %85 = tpu.matmul %64, %6, %cst_20 {dimension_numbers = #tpu.dot_dimension_numbers<[1], [0], [0], [1], [0, 0, 1, 1], [], []>} : vector<8x32xf32>, vector<32x128xf32>, vector<8x128xf32> -> vector<8x128xf32>
    %86 = arith.addf %84, %85 : vector<8x128xf32>
    %87 = arith.negf %86 : vector<8x128xf32>
    %88 = math.exp %87 : vector<8x128xf32>
    %cst_21 = arith.constant 1.000000e+00 : f32
    %89 = vector.broadcast %cst_21 : f32 to vector<8x128xf32>
    %90 = arith.addf %89, %88 : vector<8x128xf32>
    %91 = arith.divf %89, %90 : vector<8x128xf32>
    %92 = math.tanh %86 : vector<8x128xf32>
    %93 = vector.extract_strided_slice %91 {offsets = [0, 0], sizes = [8, 32], strides = [1, 1]} : vector<8x128xf32> to vector<8x32xf32>
    %94 = vector.extract_strided_slice %91 {offsets = [0, 32], sizes = [8, 32], strides = [1, 1]} : vector<8x128xf32> to vector<8x32xf32>
    %95 = vector.extract_strided_slice %92 {offsets = [0, 64], sizes = [8, 32], strides = [1, 1]} : vector<8x128xf32> to vector<8x32xf32>
    %96 = vector.extract_strided_slice %91 {offsets = [0, 96], sizes = [8, 32], strides = [1, 1]} : vector<8x128xf32> to vector<8x32xf32>
    %97 = arith.mulf %94, %62 : vector<8x32xf32>
    %98 = arith.mulf %93, %95 : vector<8x32xf32>
    %99 = arith.addf %97, %98 : vector<8x32xf32>
    %100 = math.tanh %99 : vector<8x32xf32>
    %101 = arith.mulf %96, %100 : vector<8x32xf32>
    %102 = tpu.concatenate %101, %83 in 1 : vector<8x32xf32>, vector<8x32xf32> -> vector<8x64xf32>
    %cst_22 = arith.constant dense<0.000000e+00> : vector<8x128xf32>
    %103 = tpu.matmul %102, %7, %cst_22 {dimension_numbers = #tpu.dot_dimension_numbers<[1], [0], [0], [1], [0, 0, 1, 1], [], []>} : vector<8x64xf32>, vector<64x128xf32>, vector<8x128xf32> -> vector<8x128xf32>
    %104 = vector.broadcast %8 : vector<1x128xf32> to vector<8x128xf32>
    %105 = arith.addf %103, %104 : vector<8x128xf32>
    %106 = arith.negf %105 : vector<8x128xf32>
    %107 = math.exp %106 : vector<8x128xf32>
    %cst_23 = arith.constant 1.000000e+00 : f32
    %108 = vector.broadcast %cst_23 : f32 to vector<8x128xf32>
    %109 = arith.addf %108, %107 : vector<8x128xf32>
    %110 = arith.divf %108, %109 : vector<8x128xf32>
    %111 = math.tanh %105 : vector<8x128xf32>
    %112 = vector.extract_strided_slice %110 {offsets = [0, 0], sizes = [8, 32], strides = [1, 1]} : vector<8x128xf32> to vector<8x32xf32>
    %113 = vector.extract_strided_slice %110 {offsets = [0, 32], sizes = [8, 32], strides = [1, 1]} : vector<8x128xf32> to vector<8x32xf32>
    %114 = vector.extract_strided_slice %111 {offsets = [0, 64], sizes = [8, 32], strides = [1, 1]} : vector<8x128xf32> to vector<8x32xf32>
    %115 = vector.extract_strided_slice %110 {offsets = [0, 96], sizes = [8, 32], strides = [1, 1]} : vector<8x128xf32> to vector<8x32xf32>
    %116 = arith.mulf %113, %81 : vector<8x32xf32>
    %117 = arith.mulf %112, %114 : vector<8x32xf32>
    %118 = arith.addf %116, %117 : vector<8x32xf32>
    %119 = math.tanh %118 : vector<8x32xf32>
    %120 = arith.mulf %115, %119 : vector<8x32xf32>
    %121 = vector.extract_strided_slice %5 {offsets = [24, 0], sizes = [8, 128], strides = [1, 1]} : vector<64x128xf32> to vector<8x128xf32>
    %cst_24 = arith.constant dense<0.000000e+00> : vector<8x128xf32>
    %122 = tpu.matmul %101, %6, %cst_24 {dimension_numbers = #tpu.dot_dimension_numbers<[1], [0], [0], [1], [0, 0, 1, 1], [], []>} : vector<8x32xf32>, vector<32x128xf32>, vector<8x128xf32> -> vector<8x128xf32>
    %123 = arith.addf %121, %122 : vector<8x128xf32>
    %124 = arith.negf %123 : vector<8x128xf32>
    %125 = math.exp %124 : vector<8x128xf32>
    %cst_25 = arith.constant 1.000000e+00 : f32
    %126 = vector.broadcast %cst_25 : f32 to vector<8x128xf32>
    %127 = arith.addf %126, %125 : vector<8x128xf32>
    %128 = arith.divf %126, %127 : vector<8x128xf32>
    %129 = math.tanh %123 : vector<8x128xf32>
    %130 = vector.extract_strided_slice %128 {offsets = [0, 0], sizes = [8, 32], strides = [1, 1]} : vector<8x128xf32> to vector<8x32xf32>
    %131 = vector.extract_strided_slice %128 {offsets = [0, 32], sizes = [8, 32], strides = [1, 1]} : vector<8x128xf32> to vector<8x32xf32>
    %132 = vector.extract_strided_slice %129 {offsets = [0, 64], sizes = [8, 32], strides = [1, 1]} : vector<8x128xf32> to vector<8x32xf32>
    %133 = vector.extract_strided_slice %128 {offsets = [0, 96], sizes = [8, 32], strides = [1, 1]} : vector<8x128xf32> to vector<8x32xf32>
    %134 = arith.mulf %131, %99 : vector<8x32xf32>
    %135 = arith.mulf %130, %132 : vector<8x32xf32>
    %136 = arith.addf %134, %135 : vector<8x32xf32>
    %137 = math.tanh %136 : vector<8x32xf32>
    %138 = arith.mulf %133, %137 : vector<8x32xf32>
    %139 = tpu.concatenate %138, %120 in 1 : vector<8x32xf32>, vector<8x32xf32> -> vector<8x64xf32>
    %cst_26 = arith.constant dense<0.000000e+00> : vector<8x128xf32>
    %140 = tpu.matmul %139, %7, %cst_26 {dimension_numbers = #tpu.dot_dimension_numbers<[1], [0], [0], [1], [0, 0, 1, 1], [], []>} : vector<8x64xf32>, vector<64x128xf32>, vector<8x128xf32> -> vector<8x128xf32>
    %141 = vector.broadcast %8 : vector<1x128xf32> to vector<8x128xf32>
    %142 = arith.addf %140, %141 : vector<8x128xf32>
    %143 = arith.negf %142 : vector<8x128xf32>
    %144 = math.exp %143 : vector<8x128xf32>
    %cst_27 = arith.constant 1.000000e+00 : f32
    %145 = vector.broadcast %cst_27 : f32 to vector<8x128xf32>
    %146 = arith.addf %145, %144 : vector<8x128xf32>
    %147 = arith.divf %145, %146 : vector<8x128xf32>
    %148 = math.tanh %142 : vector<8x128xf32>
    %149 = vector.extract_strided_slice %147 {offsets = [0, 0], sizes = [8, 32], strides = [1, 1]} : vector<8x128xf32> to vector<8x32xf32>
    %150 = vector.extract_strided_slice %147 {offsets = [0, 32], sizes = [8, 32], strides = [1, 1]} : vector<8x128xf32> to vector<8x32xf32>
    %151 = vector.extract_strided_slice %148 {offsets = [0, 64], sizes = [8, 32], strides = [1, 1]} : vector<8x128xf32> to vector<8x32xf32>
    %152 = vector.extract_strided_slice %147 {offsets = [0, 96], sizes = [8, 32], strides = [1, 1]} : vector<8x128xf32> to vector<8x32xf32>
    %153 = arith.mulf %150, %118 : vector<8x32xf32>
    %154 = arith.mulf %149, %151 : vector<8x32xf32>
    %155 = arith.addf %153, %154 : vector<8x32xf32>
    %156 = math.tanh %155 : vector<8x32xf32>
    %157 = arith.mulf %152, %156 : vector<8x32xf32>
    %158 = vector.extract_strided_slice %5 {offsets = [32, 0], sizes = [8, 128], strides = [1, 1]} : vector<64x128xf32> to vector<8x128xf32>
    %cst_28 = arith.constant dense<0.000000e+00> : vector<8x128xf32>
    %159 = tpu.matmul %138, %6, %cst_28 {dimension_numbers = #tpu.dot_dimension_numbers<[1], [0], [0], [1], [0, 0, 1, 1], [], []>} : vector<8x32xf32>, vector<32x128xf32>, vector<8x128xf32> -> vector<8x128xf32>
    %160 = arith.addf %158, %159 : vector<8x128xf32>
    %161 = arith.negf %160 : vector<8x128xf32>
    %162 = math.exp %161 : vector<8x128xf32>
    %cst_29 = arith.constant 1.000000e+00 : f32
    %163 = vector.broadcast %cst_29 : f32 to vector<8x128xf32>
    %164 = arith.addf %163, %162 : vector<8x128xf32>
    %165 = arith.divf %163, %164 : vector<8x128xf32>
    %166 = math.tanh %160 : vector<8x128xf32>
    %167 = vector.extract_strided_slice %165 {offsets = [0, 0], sizes = [8, 32], strides = [1, 1]} : vector<8x128xf32> to vector<8x32xf32>
    %168 = vector.extract_strided_slice %165 {offsets = [0, 32], sizes = [8, 32], strides = [1, 1]} : vector<8x128xf32> to vector<8x32xf32>
    %169 = vector.extract_strided_slice %166 {offsets = [0, 64], sizes = [8, 32], strides = [1, 1]} : vector<8x128xf32> to vector<8x32xf32>
    %170 = vector.extract_strided_slice %165 {offsets = [0, 96], sizes = [8, 32], strides = [1, 1]} : vector<8x128xf32> to vector<8x32xf32>
    %171 = arith.mulf %168, %136 : vector<8x32xf32>
    %172 = arith.mulf %167, %169 : vector<8x32xf32>
    %173 = arith.addf %171, %172 : vector<8x32xf32>
    %174 = math.tanh %173 : vector<8x32xf32>
    %175 = arith.mulf %170, %174 : vector<8x32xf32>
    %176 = tpu.concatenate %175, %157 in 1 : vector<8x32xf32>, vector<8x32xf32> -> vector<8x64xf32>
    %cst_30 = arith.constant dense<0.000000e+00> : vector<8x128xf32>
    %177 = tpu.matmul %176, %7, %cst_30 {dimension_numbers = #tpu.dot_dimension_numbers<[1], [0], [0], [1], [0, 0, 1, 1], [], []>} : vector<8x64xf32>, vector<64x128xf32>, vector<8x128xf32> -> vector<8x128xf32>
    %178 = vector.broadcast %8 : vector<1x128xf32> to vector<8x128xf32>
    %179 = arith.addf %177, %178 : vector<8x128xf32>
    %180 = arith.negf %179 : vector<8x128xf32>
    %181 = math.exp %180 : vector<8x128xf32>
    %cst_31 = arith.constant 1.000000e+00 : f32
    %182 = vector.broadcast %cst_31 : f32 to vector<8x128xf32>
    %183 = arith.addf %182, %181 : vector<8x128xf32>
    %184 = arith.divf %182, %183 : vector<8x128xf32>
    %185 = math.tanh %179 : vector<8x128xf32>
    %186 = vector.extract_strided_slice %184 {offsets = [0, 0], sizes = [8, 32], strides = [1, 1]} : vector<8x128xf32> to vector<8x32xf32>
    %187 = vector.extract_strided_slice %184 {offsets = [0, 32], sizes = [8, 32], strides = [1, 1]} : vector<8x128xf32> to vector<8x32xf32>
    %188 = vector.extract_strided_slice %185 {offsets = [0, 64], sizes = [8, 32], strides = [1, 1]} : vector<8x128xf32> to vector<8x32xf32>
    %189 = vector.extract_strided_slice %184 {offsets = [0, 96], sizes = [8, 32], strides = [1, 1]} : vector<8x128xf32> to vector<8x32xf32>
    %190 = arith.mulf %187, %155 : vector<8x32xf32>
    %191 = arith.mulf %186, %188 : vector<8x32xf32>
    %192 = arith.addf %190, %191 : vector<8x32xf32>
    %193 = math.tanh %192 : vector<8x32xf32>
    %194 = arith.mulf %189, %193 : vector<8x32xf32>
    %195 = vector.extract_strided_slice %5 {offsets = [40, 0], sizes = [8, 128], strides = [1, 1]} : vector<64x128xf32> to vector<8x128xf32>
    %cst_32 = arith.constant dense<0.000000e+00> : vector<8x128xf32>
    %196 = tpu.matmul %175, %6, %cst_32 {dimension_numbers = #tpu.dot_dimension_numbers<[1], [0], [0], [1], [0, 0, 1, 1], [], []>} : vector<8x32xf32>, vector<32x128xf32>, vector<8x128xf32> -> vector<8x128xf32>
    %197 = arith.addf %195, %196 : vector<8x128xf32>
    %198 = arith.negf %197 : vector<8x128xf32>
    %199 = math.exp %198 : vector<8x128xf32>
    %cst_33 = arith.constant 1.000000e+00 : f32
    %200 = vector.broadcast %cst_33 : f32 to vector<8x128xf32>
    %201 = arith.addf %200, %199 : vector<8x128xf32>
    %202 = arith.divf %200, %201 : vector<8x128xf32>
    %203 = math.tanh %197 : vector<8x128xf32>
    %204 = vector.extract_strided_slice %202 {offsets = [0, 0], sizes = [8, 32], strides = [1, 1]} : vector<8x128xf32> to vector<8x32xf32>
    %205 = vector.extract_strided_slice %202 {offsets = [0, 32], sizes = [8, 32], strides = [1, 1]} : vector<8x128xf32> to vector<8x32xf32>
    %206 = vector.extract_strided_slice %203 {offsets = [0, 64], sizes = [8, 32], strides = [1, 1]} : vector<8x128xf32> to vector<8x32xf32>
    %207 = vector.extract_strided_slice %202 {offsets = [0, 96], sizes = [8, 32], strides = [1, 1]} : vector<8x128xf32> to vector<8x32xf32>
    %208 = arith.mulf %205, %173 : vector<8x32xf32>
    %209 = arith.mulf %204, %206 : vector<8x32xf32>
    %210 = arith.addf %208, %209 : vector<8x32xf32>
    %211 = math.tanh %210 : vector<8x32xf32>
    %212 = arith.mulf %207, %211 : vector<8x32xf32>
    %213 = tpu.concatenate %212, %194 in 1 : vector<8x32xf32>, vector<8x32xf32> -> vector<8x64xf32>
    %cst_34 = arith.constant dense<0.000000e+00> : vector<8x128xf32>
    %214 = tpu.matmul %213, %7, %cst_34 {dimension_numbers = #tpu.dot_dimension_numbers<[1], [0], [0], [1], [0, 0, 1, 1], [], []>} : vector<8x64xf32>, vector<64x128xf32>, vector<8x128xf32> -> vector<8x128xf32>
    %215 = vector.broadcast %8 : vector<1x128xf32> to vector<8x128xf32>
    %216 = arith.addf %214, %215 : vector<8x128xf32>
    %217 = arith.negf %216 : vector<8x128xf32>
    %218 = math.exp %217 : vector<8x128xf32>
    %cst_35 = arith.constant 1.000000e+00 : f32
    %219 = vector.broadcast %cst_35 : f32 to vector<8x128xf32>
    %220 = arith.addf %219, %218 : vector<8x128xf32>
    %221 = arith.divf %219, %220 : vector<8x128xf32>
    %222 = math.tanh %216 : vector<8x128xf32>
    %223 = vector.extract_strided_slice %221 {offsets = [0, 0], sizes = [8, 32], strides = [1, 1]} : vector<8x128xf32> to vector<8x32xf32>
    %224 = vector.extract_strided_slice %221 {offsets = [0, 32], sizes = [8, 32], strides = [1, 1]} : vector<8x128xf32> to vector<8x32xf32>
    %225 = vector.extract_strided_slice %222 {offsets = [0, 64], sizes = [8, 32], strides = [1, 1]} : vector<8x128xf32> to vector<8x32xf32>
    %226 = vector.extract_strided_slice %221 {offsets = [0, 96], sizes = [8, 32], strides = [1, 1]} : vector<8x128xf32> to vector<8x32xf32>
    %227 = arith.mulf %224, %192 : vector<8x32xf32>
    %228 = arith.mulf %223, %225 : vector<8x32xf32>
    %229 = arith.addf %227, %228 : vector<8x32xf32>
    %230 = math.tanh %229 : vector<8x32xf32>
    %231 = arith.mulf %226, %230 : vector<8x32xf32>
    %232 = vector.extract_strided_slice %5 {offsets = [48, 0], sizes = [8, 128], strides = [1, 1]} : vector<64x128xf32> to vector<8x128xf32>
    %cst_36 = arith.constant dense<0.000000e+00> : vector<8x128xf32>
    %233 = tpu.matmul %212, %6, %cst_36 {dimension_numbers = #tpu.dot_dimension_numbers<[1], [0], [0], [1], [0, 0, 1, 1], [], []>} : vector<8x32xf32>, vector<32x128xf32>, vector<8x128xf32> -> vector<8x128xf32>
    %234 = arith.addf %232, %233 : vector<8x128xf32>
    %235 = arith.negf %234 : vector<8x128xf32>
    %236 = math.exp %235 : vector<8x128xf32>
    %cst_37 = arith.constant 1.000000e+00 : f32
    %237 = vector.broadcast %cst_37 : f32 to vector<8x128xf32>
    %238 = arith.addf %237, %236 : vector<8x128xf32>
    %239 = arith.divf %237, %238 : vector<8x128xf32>
    %240 = math.tanh %234 : vector<8x128xf32>
    %241 = vector.extract_strided_slice %239 {offsets = [0, 0], sizes = [8, 32], strides = [1, 1]} : vector<8x128xf32> to vector<8x32xf32>
    %242 = vector.extract_strided_slice %239 {offsets = [0, 32], sizes = [8, 32], strides = [1, 1]} : vector<8x128xf32> to vector<8x32xf32>
    %243 = vector.extract_strided_slice %240 {offsets = [0, 64], sizes = [8, 32], strides = [1, 1]} : vector<8x128xf32> to vector<8x32xf32>
    %244 = vector.extract_strided_slice %239 {offsets = [0, 96], sizes = [8, 32], strides = [1, 1]} : vector<8x128xf32> to vector<8x32xf32>
    %245 = arith.mulf %242, %210 : vector<8x32xf32>
    %246 = arith.mulf %241, %243 : vector<8x32xf32>
    %247 = arith.addf %245, %246 : vector<8x32xf32>
    %248 = math.tanh %247 : vector<8x32xf32>
    %249 = arith.mulf %244, %248 : vector<8x32xf32>
    %250 = tpu.concatenate %249, %231 in 1 : vector<8x32xf32>, vector<8x32xf32> -> vector<8x64xf32>
    %cst_38 = arith.constant dense<0.000000e+00> : vector<8x128xf32>
    %251 = tpu.matmul %250, %7, %cst_38 {dimension_numbers = #tpu.dot_dimension_numbers<[1], [0], [0], [1], [0, 0, 1, 1], [], []>} : vector<8x64xf32>, vector<64x128xf32>, vector<8x128xf32> -> vector<8x128xf32>
    %252 = vector.broadcast %8 : vector<1x128xf32> to vector<8x128xf32>
    %253 = arith.addf %251, %252 : vector<8x128xf32>
    %254 = arith.negf %253 : vector<8x128xf32>
    %255 = math.exp %254 : vector<8x128xf32>
    %cst_39 = arith.constant 1.000000e+00 : f32
    %256 = vector.broadcast %cst_39 : f32 to vector<8x128xf32>
    %257 = arith.addf %256, %255 : vector<8x128xf32>
    %258 = arith.divf %256, %257 : vector<8x128xf32>
    %259 = math.tanh %253 : vector<8x128xf32>
    %260 = vector.extract_strided_slice %258 {offsets = [0, 0], sizes = [8, 32], strides = [1, 1]} : vector<8x128xf32> to vector<8x32xf32>
    %261 = vector.extract_strided_slice %258 {offsets = [0, 32], sizes = [8, 32], strides = [1, 1]} : vector<8x128xf32> to vector<8x32xf32>
    %262 = vector.extract_strided_slice %259 {offsets = [0, 64], sizes = [8, 32], strides = [1, 1]} : vector<8x128xf32> to vector<8x32xf32>
    %263 = vector.extract_strided_slice %258 {offsets = [0, 96], sizes = [8, 32], strides = [1, 1]} : vector<8x128xf32> to vector<8x32xf32>
    %264 = arith.mulf %261, %229 : vector<8x32xf32>
    %265 = arith.mulf %260, %262 : vector<8x32xf32>
    %266 = arith.addf %264, %265 : vector<8x32xf32>
    %267 = math.tanh %266 : vector<8x32xf32>
    %268 = arith.mulf %263, %267 : vector<8x32xf32>
    %269 = vector.extract_strided_slice %5 {offsets = [56, 0], sizes = [8, 128], strides = [1, 1]} : vector<64x128xf32> to vector<8x128xf32>
    %cst_40 = arith.constant dense<0.000000e+00> : vector<8x128xf32>
    %270 = tpu.matmul %249, %6, %cst_40 {dimension_numbers = #tpu.dot_dimension_numbers<[1], [0], [0], [1], [0, 0, 1, 1], [], []>} : vector<8x32xf32>, vector<32x128xf32>, vector<8x128xf32> -> vector<8x128xf32>
    %271 = arith.addf %269, %270 : vector<8x128xf32>
    %272 = arith.negf %271 : vector<8x128xf32>
    %273 = math.exp %272 : vector<8x128xf32>
    %cst_41 = arith.constant 1.000000e+00 : f32
    %274 = vector.broadcast %cst_41 : f32 to vector<8x128xf32>
    %275 = arith.addf %274, %273 : vector<8x128xf32>
    %276 = arith.divf %274, %275 : vector<8x128xf32>
    %277 = math.tanh %271 : vector<8x128xf32>
    %278 = vector.extract_strided_slice %276 {offsets = [0, 0], sizes = [8, 32], strides = [1, 1]} : vector<8x128xf32> to vector<8x32xf32>
    %279 = vector.extract_strided_slice %276 {offsets = [0, 32], sizes = [8, 32], strides = [1, 1]} : vector<8x128xf32> to vector<8x32xf32>
    %280 = vector.extract_strided_slice %277 {offsets = [0, 64], sizes = [8, 32], strides = [1, 1]} : vector<8x128xf32> to vector<8x32xf32>
    %281 = vector.extract_strided_slice %276 {offsets = [0, 96], sizes = [8, 32], strides = [1, 1]} : vector<8x128xf32> to vector<8x32xf32>
    %282 = arith.mulf %279, %247 : vector<8x32xf32>
    %283 = arith.mulf %278, %280 : vector<8x32xf32>
    %284 = arith.addf %282, %283 : vector<8x32xf32>
    %285 = math.tanh %284 : vector<8x32xf32>
    %286 = arith.mulf %281, %285 : vector<8x32xf32>
    %287 = tpu.concatenate %286, %268 in 1 : vector<8x32xf32>, vector<8x32xf32> -> vector<8x64xf32>
    %cst_42 = arith.constant dense<0.000000e+00> : vector<8x128xf32>
    %288 = tpu.matmul %287, %7, %cst_42 {dimension_numbers = #tpu.dot_dimension_numbers<[1], [0], [0], [1], [0, 0, 1, 1], [], []>} : vector<8x64xf32>, vector<64x128xf32>, vector<8x128xf32> -> vector<8x128xf32>
    %289 = vector.broadcast %8 : vector<1x128xf32> to vector<8x128xf32>
    %290 = arith.addf %288, %289 : vector<8x128xf32>
    %291 = arith.negf %290 : vector<8x128xf32>
    %292 = math.exp %291 : vector<8x128xf32>
    %cst_43 = arith.constant 1.000000e+00 : f32
    %293 = vector.broadcast %cst_43 : f32 to vector<8x128xf32>
    %294 = arith.addf %293, %292 : vector<8x128xf32>
    %295 = arith.divf %293, %294 : vector<8x128xf32>
    %296 = math.tanh %290 : vector<8x128xf32>
    %297 = vector.extract_strided_slice %295 {offsets = [0, 0], sizes = [8, 32], strides = [1, 1]} : vector<8x128xf32> to vector<8x32xf32>
    %298 = vector.extract_strided_slice %295 {offsets = [0, 32], sizes = [8, 32], strides = [1, 1]} : vector<8x128xf32> to vector<8x32xf32>
    %299 = vector.extract_strided_slice %296 {offsets = [0, 64], sizes = [8, 32], strides = [1, 1]} : vector<8x128xf32> to vector<8x32xf32>
    %300 = vector.extract_strided_slice %295 {offsets = [0, 96], sizes = [8, 32], strides = [1, 1]} : vector<8x128xf32> to vector<8x32xf32>
    %301 = arith.mulf %298, %266 : vector<8x32xf32>
    %302 = arith.mulf %297, %299 : vector<8x32xf32>
    %303 = arith.addf %301, %302 : vector<8x32xf32>
    %304 = math.tanh %303 : vector<8x32xf32>
    %305 = arith.mulf %300, %304 : vector<8x32xf32>
    %c0_44 = arith.constant 0 : index
    %c0_45 = arith.constant 0 : index
    %306 = vector.load %arg6[%c0_44, %c0_45] : memref<32x128xf32, #tpu.memory_space<vmem>>, vector<32x128xf32>
    %cst_46 = arith.constant dense<0.000000e+00> : vector<8x128xf32>
    %307 = tpu.matmul %305, %306, %cst_46 {dimension_numbers = #tpu.dot_dimension_numbers<[1], [0], [0], [1], [0, 0, 1, 1], [], []>} : vector<8x32xf32>, vector<32x128xf32>, vector<8x128xf32> -> vector<8x128xf32>
    %c0_47 = arith.constant 0 : index
    %c0_48 = arith.constant 0 : index
    %308 = vector.load %arg7[%c0_47, %c0_48] : memref<1x128xf32, #tpu.memory_space<vmem>>, vector<1x128xf32>
    %309 = vector.broadcast %308 : vector<1x128xf32> to vector<8x128xf32>
    %310 = arith.addf %307, %309 : vector<8x128xf32>
    %cst_49 = arith.constant dense<0xFF800000> : vector<8xf32>
    %311 = vector.multi_reduction <maximumf>, %310, %cst_49 [1] : vector<8x128xf32> to vector<8xf32>
    %312 = vector.shape_cast %311 : vector<8xf32> to vector<8x1xf32>
    %313 = vector.broadcast %312 : vector<8x1xf32> to vector<8x128xf32>
    %314 = arith.subf %310, %313 : vector<8x128xf32>
    %315 = math.exp %314 : vector<8x128xf32>
    %cst_50 = arith.constant dense<0.000000e+00> : vector<8xf32>
    %316 = vector.multi_reduction <add>, %315, %cst_50 [1] : vector<8x128xf32> to vector<8xf32>
    %317 = vector.shape_cast %316 : vector<8xf32> to vector<8x1xf32>
    %318 = math.log %317 : vector<8x1xf32>
    %319 = arith.addf %318, %312 : vector<8x1xf32>
    %320 = vector.broadcast %319 : vector<8x1xf32> to vector<8x128xf32>
    %321 = arith.subf %310, %320 : vector<8x128xf32>
    %c0_51 = arith.constant 0 : index
    %c0_52 = arith.constant 0 : index
    %322 = vector.load %arg8[%c0_51, %c0_52] : memref<8x128xf32, #tpu.memory_space<vmem>>, vector<8x128xf32>
    tpu.vector_store %arg8[%c0_51, %c0_52], %321 {strides = array<i32>} : memref<8x128xf32, #tpu.memory_space<vmem>>, vector<8x128xf32>,
    return
  }
}

</mosaic_0001>

<bundles_post_ra>
// kernel: tpu_custom_call.1
= control target key start
LH: loop header
LB: loop body
LE: loop exit
PB: predicated region body
PF: predicated region fallthrough
CT: control target
= control target key end

     0   :  { %13 = vsyncpa [#allocation3], 0  ;;  %s3417_s0 = inlined_call_operand.hbm [shape: f32[64,57], index: 0, kind: input, shape index: {}]   ;;  %s3418_s1 = inlined_call_operand.hbm [shape: f32[57,128], index: 1, kind: input, shape index: {}]   ;;  %s3419_s2 = inlined_call_operand.hbm [shape: f32[32,128], index: 2, kind: input, shape index: {}]   ;;  %s3420_s3 = inlined_call_operand.vmem [shape: f32[1,128], index: 3, kind: input, shape index: {}]   ;;  %s3421_s4 = inlined_call_operand.hbm [shape: f32[64,128], index: 4, kind: input, shape index: {}]   ;;  %s3422_s5 = inlined_call_operand.vmem [shape: f32[1,128], index: 5, kind: input, shape index: {}]   ;;  %s3423_s6 = inlined_call_operand.hbm [shape: f32[32,128], index: 6, kind: input, shape index: {}]   ;;  %s3424_s7 = inlined_call_operand.vmem [shape: f32[1,128], index: 7, kind: input, shape index: {}]   ;;  %s3425_s8 = inlined_call_operand.hbm [shape: f32[8,128], index: 8, kind: output, shape index: {}]  }
   0x1   :  { %14 = vsyncpa [#allocation6], 0 }
   0x2   :  { %15 = vsyncpa [#allocation9], 0 }
   0x3   :  { %16 = vsyncpa [#allocation4], 0  ;;  %s2922_s27 = smov [#allocation5]   ;;  %s2923_s29 = smov [#allocation8]  }
   0x4   :  { %s34_s28 = sshll.u32 %s2922_s27, 4  ;;  %s60_s30 = sshll.u32 %s2923_s29, 4  ;;  %s35_s28 = int_to_ptr.vmem [resolvable:$true] %s34_s28  ;;  %s2981_s30 = int_to_ptr.vmem [resolvable:$true] %s60_s30 }
   0x5   :  { %s2782_s11 = scalar_lea.hbm %s3418_s1, 1024 }
   0x6   :  { %p2783_p0 = scmp.ne.s32.totalorder %s3418_s1, %s2782_s11  ;;  %p2786_p1 = scmp.lt.u32.totalorder %s2782_s11, %s3418_s1 }
   0x8   :  { %p2788_p2 = pnand %p2786_p1, %p2783_p0 }
   0xa   :  { %2791 = shalt.err (!%p2788_p2)
}
   0xb   :  { %s2792_s16 = scalar_lea.vmem %s35_s28, 1024  ;;  %p2797_p4 = scmp.lt.s32.totalorder %s35_s28, %s35_s28 }
   0xc   :  { %p2793_p3 = scmp.ne.s32.totalorder %s35_s28, %s2792_s16  ;;  %p2798_p5 = scmp.lt.s32.totalorder %s2792_s16, %s2792_s16 }
   0xe   :  { %p2799_p6 = por %p2798_p5, %p2797_p4 }
  0x10   :  { %p2800_p7 = pnand %p2799_p6, %p2793_p3 }
  0x12   :  { %2803 = shalt.err (!%p2800_p7)
}
  0x13   :  { %s2924_s17 = smov 128   ;;  %s2925_s18 = smov 8  }
  0x14   :  { %40 = dma.hbm_to_vmem [thread:$0]  %s3418_s1, 1024, %s35_s28, [#allocation6], %s2924_s17, %s2924_s17, %s2925_s18  }
  0x15   :  { %s2804_s23 = scalar_lea.hbm %s3421_s4, 1024 }
  0x16   :  { %p2805_p8 = scmp.ne.s32.totalorder %s3421_s4, %s2804_s23  ;;  %p2808_p9 = scmp.lt.u32.totalorder %s2804_s23, %s3421_s4 }
  0x18   :  { %p2810_p10 = pnand %p2808_p9, %p2805_p8 }
  0x1a   :  { %2813 = shalt.err (!%p2810_p10)
}
  0x1b   :  { %s2814_s29 = scalar_lea.vmem %s2981_s30, 1024  ;;  %p2819_p12 = scmp.lt.s32.totalorder %s2981_s30, %s2981_s30 }
  0x1c   :  { %p2815_p11 = scmp.ne.s32.totalorder %s2981_s30, %s2814_s29  ;;  %p2820_p13 = scmp.lt.s32.totalorder %s2814_s29, %s2814_s29 }
  0x1e   :  { %p2821_p0 = por %p2820_p13, %p2819_p12 }
  0x20   :  { %p2822_p1 = pnand %p2821_p0, %p2815_p11 }
  0x22   :  { %2825 = shalt.err (!%p2822_p1)
}
  0x23   :  { %66 = dma.hbm_to_vmem [thread:$0]  %s3421_s4, 1024, %s2981_s30, [#allocation9], %s2924_s17, %s2924_s17, %s2925_s18  }
  0x24   :  { %s2926_s9 = smov [#allocation2]   ;;  %s2927_s11 = smov [#allocation7]  }
  0x25   :  { %s22_s10 = sshll.u32 %s2926_s9, 4  ;;  %s46_s12 = sshll.u32 %s2927_s11, 4  ;;  %s23_s10 = int_to_ptr.vmem [resolvable:$true] %s22_s10  ;;  %s3018_s12 = int_to_ptr.vmem [resolvable:$true] %s46_s12 }
  0x26   :  { %s2826_s15 = scalar_lea.hbm %s3417_s0, 1024 }
  0x27   :  { %p2827_p2 = scmp.ne.s32.totalorder %s3417_s0, %s2826_s15  ;;  %p2830_p3 = scmp.lt.u32.totalorder %s2826_s15, %s3417_s0 }
  0x29   :  { %p2832_p4 = pnand %p2830_p3, %p2827_p2 }
  0x2b   :  { %2835 = shalt.err (!%p2832_p4)
}
  0x2c   :  { %s2836_s4 = scalar_lea.vmem %s23_s10, 1024  ;;  %p2841_p6 = scmp.lt.s32.totalorder %s23_s10, %s23_s10 }
  0x2d   :  { %p2837_p5 = scmp.ne.s32.totalorder %s23_s10, %s2836_s4  ;;  %p2842_p7 = scmp.lt.s32.totalorder %s2836_s4, %s2836_s4 }
  0x2f   :  { %p2843_p8 = por %p2842_p7, %p2841_p6 }
  0x31   :  { %p2844_p9 = pnand %p2843_p8, %p2837_p5 }
  0x33   :  { %2847 = shalt.err (!%p2844_p9)
}
  0x34   :  { %28 = dma.hbm_to_vmem [thread:$0]  %s3417_s0, 1024, %s23_s10, [#allocation3], %s2924_s17, %s2924_s17, %s2925_s18  }
  0x35   :  { %s2848_s25 = scalar_lea.hbm %s3419_s2, 512 }
  0x36   :  { %p2849_p10 = scmp.ne.s32.totalorder %s3419_s2, %s2848_s25  ;;  %p2852_p11 = scmp.lt.u32.totalorder %s2848_s25, %s3419_s2 }
  0x38   :  { %p2854_p12 = pnand %p2852_p11, %p2849_p10 }
  0x3a   :  { %2857 = shalt.err (!%p2854_p12)
}
  0x3b   :  { %s2858_s28 = scalar_lea.vmem %s3018_s12, 512  ;;  %p2863_p0 = scmp.lt.s32.totalorder %s3018_s12, %s3018_s12 }
  0x3c   :  { %p2859_p13 = scmp.ne.s32.totalorder %s3018_s12, %s2858_s28  ;;  %p2864_p1 = scmp.lt.s32.totalorder %s2858_s28, %s2858_s28 }
  0x3e   :  { %p2865_p2 = por %p2864_p1, %p2863_p0 }
  0x40   :  { %p2866_p3 = pnand %p2865_p2, %p2859_p13 }
  0x42   :  { %2869 = shalt.err (!%p2866_p3)
}
  0x43   :  { %52 = dma.hbm_to_vmem [thread:$0]  %s3419_s2, 512, %s3018_s12, [#allocation6], %s2924_s17, %s2924_s17, %s2925_s18  }
  0x44   :  { %s2928_s10 = smov [#allocation10]   ;;  %s2870_s15 = scalar_lea.hbm %s3423_s6, 512 }
  0x45   :  { %s74_s11 = sshll.u32 %s2928_s10, 4  ;;  %p2871_p4 = scmp.ne.s32.totalorder %s3423_s6, %s2870_s15  ;;  %s75_s11 = int_to_ptr.vmem [resolvable:$true] %s74_s11 }
  0x46   :  { %p2874_p5 = scmp.lt.u32.totalorder %s2870_s15, %s3423_s6 }
  0x48   :  { %p2876_p6 = pnand %p2874_p5, %p2871_p4 }
  0x4a   :  { %2879 = shalt.err (!%p2876_p6)
}
  0x4b   :  { %s2880_s4 = scalar_lea.vmem %s75_s11, 512  ;;  %p2885_p8 = scmp.lt.s32.totalorder %s75_s11, %s75_s11 }
  0x4c   :  { %p2881_p7 = scmp.ne.s32.totalorder %s75_s11, %s2880_s4  ;;  %p2886_p9 = scmp.lt.s32.totalorder %s2880_s4, %s2880_s4 }
  0x4e   :  { %p2887_p10 = por %p2886_p9, %p2885_p8 }
  0x50   :  { %p2888_p11 = pnand %p2887_p10, %p2881_p7 }
  0x52   :  { %2891 = shalt.err (!%p2888_p11)
}
  0x53   :  { %80 = dma.hbm_to_vmem [thread:$0]  %s3423_s6, 512, %s75_s11, [#allocation9], %s2924_s17, %s2924_s17, %s2925_s18  }
  0x54   :  { %2914 = dma.done.wait [#allocation3], 1024  }
  0x55   :  { %2915 = vsyncadd [#allocation3], 4294966272 }
  0x56   :  { %2916 = dma.done.wait [#allocation6], 1536  }
  0x57   :  { %2917 = vsyncadd [#allocation6], 4294965760 }
  0x58   :  { %2918 = dma.done.wait [#allocation9], 1536  }
  0x59   :  { %2919 = vsyncadd [#allocation9], 4294965760  ;;  %v2929_v0 = vmov 0.0|0.0   ;;  %vm2930_vm0 = vmmov 0   ;;  %v2931_v1 = vmov 0.0   ;;  %v106_v2 = vld [vmem:[#allocation5] sm:$0xff] }
  0x5a   :  { %2486 = vmatprep.subr.bf16.mxu1 %v2929_v0  ;;  %2225 = vmatprep.mubr.msk.f32.mxu1 %vm2930_vm0, %v2931_v1  ;;  %v107_v3 = vld [vmem:[#allocation5 + $0x8] sm:$0xff]  ;;  %v108_v4 = vld [vmem:[#allocation5 + $0x10] sm:$0xff]  ;;  %v109_v6 = vld [vmem:[#allocation5 + $0x18] sm:$0xff]  ;;  %vm121_vm1 = vcmask 465920   ;;  %vm146_vm2 = vcmask 1040384   ;;  %vm2932_vm3 = vmmov 1  }
  0x5b   :  { %v2468_v5 = vpack.c.bf16 %v107_v3, %v106_v2  ;;  %v110_v7 = vld [vmem:[#allocation5 + $0x20] sm:$0xff]  ;;  %v2472_v8 = vpack.c.bf16 %v109_v6, %v108_v4  ;;  %v111_v9 = vld [vmem:[#allocation5 + $0x28] sm:$0xff]  ;;  %v257_v14 = vld [vmem:[#allocation7 + $0x10] sm:$0xff]  ;;  %s2933_s18 = smov 64   ;;  %vm268_vm5 = vcmask 261120   ;;  %vm378_vm6 = vcmask 523264  }
  0x5c   :  { %v255_v10 = vld [vmem:[#allocation7] sm:$0xff]  ;;  %v256_v11 = vld [vmem:[#allocation7 + $0x8] sm:$0xff]  ;;  %v258_v15 = vld [vmem:[#allocation7 + $0x18] sm:$0xff]  ;;  %v2476_v16 = vpack.c.bf16 %v111_v9, %v110_v7  ;;  %s2935_s24 = smov [#allocation11]  }
  0x5d   :  { %2469 = vmatprep.subr.bf16.mxu0 %v2468_v5  ;;  %v3073_v12 = vpack.c.bf16 %v256_v11, %v255_v10  ;;  %v98_v13 = vld [vmem:[#allocation2] sm:$0xff]  ;;  %v3077_v17 = vpack.c.bf16 %v258_v15, %v257_v14  ;;  %v112_v18 = vld [vmem:[#allocation5 + $0x30] sm:$0xff]  ;;  %v113_v19 = vld [vmem:[#allocation5 + $0x38] sm:$0x1]  ;;  %s2001_s25 = sshll.u32 %s2935_s24, 4  ;;  %s2002_s25 = int_to_ptr.vmem [resolvable:$true] %s2001_s25 }
  0x5e   :  { %2471 = vmatpush3.bf16.msra.mxu0 %v2468_v5  ;;  %2205 = vmatprep.mubr.msk.f32.mxu0 %vm121_vm1, %v98_v13  ;;  %v2480_v20 = vpack.c.bf16 %v113_v19, %v112_v18  ;;  %vm2481_vm4 = vmpackc.low %vm146_vm2, %vm2932_vm3  ;;  %v99_v21 = vld [vmem:[#allocation2 + $0x8] sm:$0xff]  ;;  %v3094_v24 = vld [vmem:[%s3420_s3] ss:$0 sm:$0xff]  ;;  %s2934_s3 = smov 32   ;;  %p2897_p13 = scmp.lt.s32.totalorder %s2002_s25, %s2002_s25 }
  0x5f   :  { %2473 = vmatprep.subr.bf16.mxu0 %v2472_v8  ;;  %2488 = vmatpush3.bf16.msra.mxu1 %v3073_v12  ;;  %v259_v39 = vld [vmem:[#allocation8] sm:$0xff]  ;;  %v260_v40 = vld [vmem:[#allocation8 + $0x8] sm:$0xff]  ;;  %v100_v41 = vld [vmem:[#allocation2 + $0x10] sm:$0xff] }
  0x60   :  { %2489 = vmatprep.subr.bf16.mxu1 %v2929_v0  ;;  %v3104_v42 = vpack.c.bf16 %v260_v40, %v259_v39  ;;  %v101_v43 = vld [vmem:[#allocation2 + $0x18] sm:$0xff]  ;;  %v261_v44 = vld [vmem:[#allocation8 + $0x10] sm:$0xff]  ;;  %v102_v46 = vld [vmem:[#allocation2 + $0x20] sm:$0xff] }
  0x61   :  { %v262_v45 = vld [vmem:[#allocation8 + $0x18] sm:$0xff]  ;;  %v103_v48 = vld [vmem:[#allocation2 + $0x28] sm:$0xff]  ;;  %v263_v49 = vld [vmem:[#allocation8 + $0x20] sm:$0xff] }
  0x62   :  { %2475 = vmatpush3.bf16.msra.mxu0 %v2472_v8  ;;  %v3109_v47 = vpack.c.bf16 %v262_v45, %v261_v44  ;;  %v264_v50 = vld [vmem:[#allocation8 + $0x28] sm:$0xff]  ;;  %v104_v51 = vld [vmem:[#allocation2 + $0x30] sm:$0xff]  ;;  %v105_v53 = vld [vmem:[#allocation2 + $0x38] sm:$0xff] }
  0x63   :  { %2477 = vmatprep.subr.bf16.mxu0 %v2476_v16  ;;  %2491 = vmatpush3.bf16.msra.mxu1 %v3077_v17  ;;  %v3115_v52 = vpack.c.bf16 %v264_v50, %v263_v49  ;;  %v265_v54 = vld [vmem:[#allocation8 + $0x30] sm:$0xff]  ;;  %v266_v55 = vld [vmem:[#allocation8 + $0x38] sm:$0xff]  ;;  %v3166_v7 = vld [vmem:[%s3422_s5] ss:$0 sm:$0xff] }
  0x64   :  { %2492 = vmatprep.subr.bf16.mxu1 %v2929_v0  ;;  %v3122_v57 = vpack.c.bf16 %v266_v55, %v265_v54 }
  0x66   :  { %2479 = vmatpush3.bf16.msra.mxu0 %v2476_v16  ;;  %2226 = vmatmul.mubr.f32.vlgmr.msra.gmra.mrb[0].mxu1 %v2931_v1 }
  0x67   :  { %2482 = vmatprep.subr.msk.bf16.mxu0 %vm2481_vm4, %v2480_v20  ;;  %2244 = vmatprep.mubr.msk.f32.mxu1 %vm2930_vm0, %v2931_v1 }
  0x68   :  { %2494 = vmatpush3.bf16.msra.mxu1 %v3104_v42 }
  0x69   :  { %2495 = vmatprep.subr.bf16.mxu1 %v2929_v0 }
  0x6a   :  { %2485 = vmatpush3.bf16.msk.msra.mxu0 %vm2481_vm4, %v2480_v20 }
  0x6b   :  { %2504 = vmatprep.subr.bf16.mxu0 %v2929_v0 }
  0x6c   :  { %2497 = vmatpush3.bf16.msra.mxu1 %v3109_v47 }
  0x6d   :  { %2206 = vmatmul.mubr.msk.f32.vlgmr.msra.gmra.mrb[0].mxu0 %vm121_vm1, %v99_v21  ;;  %2498 = vmatprep.subr.bf16.mxu1 %v2929_v0 }
  0x6e   :  { %2506 = vmatpush3.bf16.msra.mxu0 %v3073_v12  ;;  %2208 = vmatprep.mubr.msk.f32.mxu0 %vm121_vm1, %v100_v41 }
  0x6f   :  { %2507 = vmatprep.subr.bf16.mxu0 %v2929_v0 }
  0x70   :  { %2500 = vmatpush3.bf16.msra.mxu1 %v3115_v52 }
  0x71   :  { %2209 = vmatmul.mubr.msk.f32.gmra.mrb[2].mxu0 %vm121_vm1, %v101_v43  ;;  %2501 = vmatprep.subr.bf16.mxu1 %v2929_v0 }
  0x72   :  { %2509 = vmatpush3.bf16.msra.mxu0 %v3077_v17  ;;  %2211 = vmatprep.mubr.msk.f32.mxu0 %vm121_vm1, %v102_v46 }
  0x73   :  { %2522 = vmatprep.subr.bf16.mxu0 %v2929_v0 }
  0x74   :  { %2503 = vmatpush3.bf16.msra.mxu1 %v3122_v57 }
  0x75   :  { %2212 = vmatmul.mubr.msk.f32.gmra.mrb[4].mxu0 %vm121_vm1, %v103_v48  ;;  %2510 = vmatprep.subr.bf16.mxu1 %v2929_v0 }
  0x76   :  { %2214 = vmatprep.mubr.msk.f32.mxu0 %vm121_vm1, %v104_v51 }
  0x79   :  { %2215 = vmatmul.mubr.msk.f32.gmra.mrb[6].mxu0 %vm121_vm1, %v105_v53 }
  0x7a   :  { %2255 = vmatprep.mubr.msk.f32.mxu0 %vm2930_vm0, %v2931_v1 }
 0x139   :  { %v338_v22 = vpop.f32.mrb[0].mxu1 }
 0x13a   :  { %v2227_v23 = vpop.f32.mrb[1].mxu1 }
 0x140   :  { %v3096_v25 = vpop.f32.mrb[0].mxu0 }
 0x141   :  { %v216_v26 = vpop.f32.mrb[1].mxu0  ;;  %v222_v6 = vadd.f32 %v3096_v25, %v3094_v24 }
 0x142   :  { %v217_v27 = vadd.f32 %v3094_v24, %v216_v26 }
 0x144   :  { %v342_v28 = vadd.f32 %v338_v22, %v217_v27  ;;  %v3130_v60 = vpop.f32.mrb[2].mxu0 }
 0x145   :  { %v3132_v61 = vpop.f32.mrb[3].mxu0 }
 0x146   :  { %2650 = vtanh.f32 %v342_v28  ;;  %v2022_v30 = vmul.f32 -1.442695, %v342_v28  ;;  %v227_v48 = vadd.f32 %v3094_v24, %v3132_v61 }
 0x148   :  { %2652 = vpow2.f32 %v2022_v30  ;;  %v3134_v62 = vpop.f32.mrb[4].mxu0 }
 0x149   :  { %v3136_v63 = vpop.f32.mrb[5].mxu0 }
 0x14c   :  { %v3138_v2 = vpop.f32.mrb[6].mxu0 }
 0x14d   :  { %v3140_v3 = vpop.f32.mrb[7].mxu0 }
 0x150   :  { %v2651_v29 = vpop.eup %2650 }
 0x151   :  { %352 = vrot.lane.b32.xlu0 %v2651_v29, %s2933_s18 }
 0x152   :  { %v2653_v31 = vpop.eup %2652 }
 0x153   :  { %v346_v32 = vadd.f32 1.0, %v2653_v31 }
 0x155   :  { %2654 = vrcp.f32 %v346_v32 }
 0x15f   :  { %v2655_v33 = vpop.eup %2654 }
 0x160   :  { %v350_v36 = vmul.f32 0.0, %v2655_v33 }
 0x1c3   :  { %v353_v34 = vpop.permute.xlu0 %352 }
 0x1c4   :  { %v355_v35 = vmul.f32 %v2655_v33, %v353_v34 }
 0x1c6   :  { %357 = vrot.lane.b32.xlu0 %v355_v35, %s2934_s3 }
 0x238   :  { %v358_v37 = vpop.permute.xlu0 %357 }
 0x239   :  { %v3101_v38 = vadd.f32 %v358_v37, %v350_v36 }
 0x23b   :  { %2656 = vtanh.f32 %v3101_v38 }
 0x245   :  { %v2657_v56 = vpop.eup %2656 }
 0x246   :  { %363 = vrot.lane.b32.xlu1 %v2657_v56, %s2933_s18 }
 0x2b8   :  { %v364_v58 = vpop.permute.xlu1 %363 }
 0x2b9   :  { %v366_v59 = vmul.f32 %v2655_v33, %v364_v58 }
 0x2bb   :  { %368 = vrot.lane.b32.xlu1 %v366_v59, %s2934_s3 }
 0x32d   :  { %v369_v4 = vpop.permute.xlu1 %368 }
 0x32e   :  { %v371_v5 = vsel %vm268_vm5, %v369_v4, 0.0  ;;  %2256 = vmatmul.mubr.msk.f32.vlgmr.msra.gmra.mrb[8].mxu0 %vm268_vm5, %v369_v4 }
 0x32f   :  { %2245 = vmatmul.mubr.msk.f32.vlgmr.msra.gmra.mrb[2].mxu1 %vm378_vm6, %v371_v5  ;;  %2524 = vmatpush3.bf16.msra.mxu0 %v3073_v12 }
 0x330   :  { %2512 = vmatpush3.bf16.msra.mxu1 %v3104_v42  ;;  %2525 = vmatprep.subr.bf16.mxu0 %v2929_v0 }
 0x331   :  { %2513 = vmatprep.subr.bf16.mxu1 %v2929_v0  ;;  %2285 = vmatprep.mubr.msk.f32.mxu0 %vm2930_vm0, %v2931_v1 }
 0x332   :  { %2274 = vmatprep.mubr.msk.f32.mxu1 %vm2930_vm0, %v2931_v1 }
 0x333   :  { %2527 = vmatpush3.bf16.msra.mxu0 %v3077_v17 }
 0x334   :  { %2515 = vmatpush3.bf16.msra.mxu1 %v3109_v47  ;;  %2528 = vmatprep.subr.bf16.mxu0 %v2929_v0 }
 0x335   :  { %2516 = vmatprep.subr.bf16.mxu1 %v2929_v0 }
 0x338   :  { %2518 = vmatpush3.bf16.msra.mxu1 %v3115_v52 }
 0x339   :  { %2519 = vmatprep.subr.bf16.mxu1 %v2929_v0 }
 0x33c   :  { %2521 = vmatpush3.bf16.msra.mxu1 %v3122_v57 }
 0x33d   :  { %2540 = vmatprep.subr.bf16.mxu1 %v2929_v0 }
 0x401   :  { %v544_v8 = vpop.f32.mrb[8].mxu0 }
 0x402   :  { %v548_v9 = vadd.f32 %v544_v8, %v222_v6  ;;  %v448_v10 = vpop.f32.mrb[2].mxu1  ;;  %v2257_v11 = vpop.f32.mrb[9].mxu0 }
 0x403   :  { %v449_v13 = vadd.f32 %v3166_v7, %v448_v10  ;;  %v2246_v14 = vpop.f32.mrb[3].mxu1 }
 0x404   :  { %2658 = vtanh.f32 %v548_v9  ;;  %v2027_v18 = vmul.f32 -1.442695, %v548_v9 }
 0x405   :  { %2660 = vtanh.f32 %v449_v13  ;;  %v2025_v19 = vmul.f32 -1.442695, %v449_v13 }
 0x406   :  { %2662 = vpow2.f32 %v2027_v18 }
 0x407   :  { %2664 = vpow2.f32 %v2025_v19 }
 0x40e   :  { %v2659_v15 = vpop.eup %2658 }
 0x40f   :  { %v2661_v16 = vpop.eup %2660  ;;  %558 = vrot.lane.b32.xlu1 %v2659_v15, %s2933_s18 }
 0x410   :  { %461 = vrot.lane.b32.xlu0 %v2661_v16, %s2933_s18  ;;  %v2663_v20 = vpop.eup %2662 }
 0x411   :  { %v2665_v21 = vpop.eup %2664  ;;  %v552_v22 = vadd.f32 1.0, %v2663_v20 }
 0x412   :  { %v455_v23 = vadd.f32 1.0, %v2665_v21 }
 0x413   :  { %2666 = vrcp.f32 %v552_v22 }
 0x414   :  { %2668 = vrcp.f32 %v455_v23 }
 0x41d   :  { %v2667_v25 = vpop.eup %2666 }
 0x41e   :  { %v2669_v27 = vpop.eup %2668  ;;  %v556_v31 = vmul.f32 %v2667_v25, %v3101_v38 }
 0x41f   :  { %v459_v33 = vmul.f32 0.0, %v2669_v27 }
 0x481   :  { %v559_v26 = vpop.permute.xlu1 %558 }
 0x482   :  { %v561_v28 = vmul.f32 %v2667_v25, %v559_v26  ;;  %v462_v29 = vpop.permute.xlu0 %461 }
 0x483   :  { %v464_v30 = vmul.f32 %v2669_v27, %v462_v29 }
 0x484   :  { %563 = vrot.lane.b32.xlu1 %v561_v28, %s2934_s3 }
 0x485   :  { %466 = vrot.lane.b32.xlu0 %v464_v30, %s2934_s3 }
 0x4f6   :  { %v564_v32 = vpop.permute.xlu1 %563 }
 0x4f7   :  { %v3174_v34 = vadd.f32 %v564_v32, %v556_v31  ;;  %v467_v35 = vpop.permute.xlu0 %466 }
 0x4f8   :  { %v3176_v36 = vadd.f32 %v467_v35, %v459_v33  ;;  %v232_v33 = vadd.f32 %v3130_v60, %v3094_v24 }
 0x4f9   :  { %2670 = vtanh.f32 %v3174_v34 }
 0x4fa   :  { %2672 = vtanh.f32 %v3176_v36 }
 0x503   :  { %v2671_v37 = vpop.eup %2670 }
 0x504   :  { %v2673_v39 = vpop.eup %2672  ;;  %569 = vrot.lane.b32.xlu1 %v2671_v37, %s2933_s18 }
 0x505   :  { %472 = vrot.lane.b32.xlu0 %v2673_v39, %s2933_s18 }
 0x576   :  { %v570_v40 = vpop.permute.xlu1 %569 }
 0x577   :  { %v572_v41 = vmul.f32 %v2667_v25, %v570_v40  ;;  %v473_v38 = vpop.permute.xlu0 %472 }
 0x578   :  { %v475_v43 = vmul.f32 %v2669_v27, %v473_v38 }
 0x579   :  { %574 = vrot.lane.b32.xlu0 %v572_v41, %s2934_s3 }
 0x57a   :  { %578 = vrot.lane.b32.xlu1 %v475_v43, %s2933_s18 }
 0x5eb   :  { %v575_v44 = vpop.permute.xlu0 %574 }
 0x5ec   :  { %v579_v45 = vpop.permute.xlu1 %578  ;;  %2286 = vmatmul.mubr.msk.f32.vlgmr.msra.gmra.mrb[10].mxu0 %vm268_vm5, %v575_v44 }
 0x5ed   :  { %v581_v46 = vsel %vm268_vm5, %v575_v44, %v579_v45  ;;  %2530 = vmatpush3.bf16.msra.mxu0 %v3104_v42  ;;  %2304 = vmatprep.mubr.msk.f32.mxu0 %vm2930_vm0, %v2931_v1 }
 0x5ee   :  { %2275 = vmatmul.mubr.msk.f32.vlgmr.msra.gmra.mrb[4].mxu1 %vm378_vm6, %v581_v46  ;;  %2531 = vmatprep.subr.bf16.mxu0 %v2929_v0 }
 0x5ef   :  { %2542 = vmatpush3.bf16.msra.mxu1 %v3073_v12  ;;  %2315 = vmatprep.mubr.msk.f32.mxu1 %vm2930_vm0, %v2931_v1 }
 0x5f0   :  { %2543 = vmatprep.subr.bf16.mxu1 %v2929_v0 }
 0x5f1   :  { %2533 = vmatpush3.bf16.msra.mxu0 %v3109_v47 }
 0x5f2   :  { %2534 = vmatprep.subr.bf16.mxu0 %v2929_v0 }
 0x5f3   :  { %2545 = vmatpush3.bf16.msra.mxu1 %v3077_v17 }
 0x5f4   :  { %2546 = vmatprep.subr.bf16.mxu1 %v2929_v0 }
 0x5f5   :  { %2536 = vmatpush3.bf16.msra.mxu0 %v3115_v52 }
 0x5f6   :  { %2537 = vmatprep.subr.bf16.mxu0 %v2929_v0 }
 0x5f9   :  { %2539 = vmatpush3.bf16.msra.mxu0 %v3122_v57 }
 0x5fa   :  { %2558 = vmatprep.subr.bf16.mxu0 %v2929_v0 }
 0x6bf   :  { %v747_v49 = vpop.f32.mrb[10].mxu0 }
 0x6c0   :  { %v751_v50 = vadd.f32 %v747_v49, %v227_v48  ;;  %v2287_v51 = vpop.f32.mrb[11].mxu0 }
 0x6c1   :  { %v651_v53 = vpop.f32.mrb[4].mxu1 }
 0x6c2   :  { %2674 = vtanh.f32 %v751_v50  ;;  %v652_v54 = vadd.f32 %v3166_v7, %v651_v53  ;;  %v2276_v55 = vpop.f32.mrb[5].mxu1  ;;  %v2031_v59 = vmul.f32 -1.442695, %v751_v50 }
 0x6c4   :  { %2676 = vtanh.f32 %v652_v54  ;;  %v2029_v4 = vmul.f32 -1.442695, %v652_v54 }
 0x6c5   :  { %2678 = vpow2.f32 %v2031_v59 }
 0x6c6   :  { %2680 = vpow2.f32 %v2029_v4 }
 0x6cc   :  { %v2675_v56 = vpop.eup %2674 }
 0x6cd   :  { %761 = vrot.lane.b32.xlu1 %v2675_v56, %s2933_s18 }
 0x6ce   :  { %v2677_v58 = vpop.eup %2676 }
 0x6cf   :  { %664 = vrot.lane.b32.xlu0 %v2677_v58, %s2933_s18  ;;  %v2679_v61 = vpop.eup %2678 }
 0x6d0   :  { %v2681_v5 = vpop.eup %2680  ;;  %v755_v6 = vadd.f32 1.0, %v2679_v61 }
 0x6d1   :  { %v658_v8 = vadd.f32 1.0, %v2681_v5 }
 0x6d2   :  { %2682 = vrcp.f32 %v755_v6 }
 0x6d3   :  { %2684 = vrcp.f32 %v658_v8 }
 0x6dc   :  { %v2683_v9 = vpop.eup %2682 }
 0x6dd   :  { %v2685_v13 = vpop.eup %2684  ;;  %v759_v16 = vmul.f32 %v2683_v9, %v3174_v34 }
 0x6de   :  { %v662_v20 = vmul.f32 %v2685_v13, %v3176_v36 }
 0x73f   :  { %v762_v10 = vpop.permute.xlu1 %761 }
 0x740   :  { %v764_v11 = vmul.f32 %v2683_v9, %v762_v10 }
 0x741   :  { %v665_v14 = vpop.permute.xlu0 %664 }
 0x742   :  { %766 = vrot.lane.b32.xlu1 %v764_v11, %s2934_s3  ;;  %v667_v15 = vmul.f32 %v2685_v13, %v665_v14 }
 0x744   :  { %669 = vrot.lane.b32.xlu0 %v667_v15, %s2934_s3 }
 0x7b4   :  { %v767_v18 = vpop.permute.xlu1 %766 }
 0x7b5   :  { %v3211_v19 = vadd.f32 %v767_v18, %v759_v16  ;;  %v237_v18 = vadd.f32 %v3094_v24, %v3136_v63 }
 0x7b6   :  { %v670_v21 = vpop.permute.xlu0 %669 }
 0x7b7   :  { %2686 = vtanh.f32 %v3211_v19  ;;  %v3215_v22 = vadd.f32 %v670_v21, %v662_v20 }
 0x7b9   :  { %2688 = vtanh.f32 %v3215_v22 }
 0x7c1   :  { %v2687_v23 = vpop.eup %2686 }
 0x7c2   :  { %772 = vrot.lane.b32.xlu1 %v2687_v23, %s2933_s18 }
 0x7c3   :  { %v2689_v25 = vpop.eup %2688 }
 0x7c4   :  { %675 = vrot.lane.b32.xlu0 %v2689_v25, %s2933_s18 }
 0x834   :  { %v773_v26 = vpop.permute.xlu1 %772 }
 0x835   :  { %v775_v27 = vmul.f32 %v2683_v9, %v773_v26 }
 0x836   :  { %v676_v28 = vpop.permute.xlu0 %675 }
 0x837   :  { %777 = vrot.lane.b32.xlu0 %v775_v27, %s2934_s3  ;;  %v678_v29 = vmul.f32 %v2685_v13, %v676_v28 }
 0x839   :  { %781 = vrot.lane.b32.xlu1 %v678_v29, %s2933_s18 }
 0x8a9   :  { %v778_v30 = vpop.permute.xlu0 %777 }
 0x8aa   :  { %2316 = vmatmul.mubr.msk.f32.vlgmr.msra.gmra.mrb[6].mxu1 %vm268_vm5, %v778_v30 }
 0x8ab   :  { %2548 = vmatpush3.bf16.msra.mxu1 %v3104_v42  ;;  %2334 = vmatprep.mubr.msk.f32.mxu1 %vm2930_vm0, %v2931_v1  ;;  %v782_v31 = vpop.permute.xlu1 %781 }
 0x8ac   :  { %2549 = vmatprep.subr.bf16.mxu1 %v2929_v0  ;;  %v784_v32 = vsel %vm268_vm5, %v778_v30, %v782_v31 }
 0x8ad   :  { %2305 = vmatmul.mubr.msk.f32.vlgmr.msra.gmra.mrb[12].mxu0 %vm378_vm6, %v784_v32 }
 0x8ae   :  { %2560 = vmatpush3.bf16.msra.mxu0 %v3073_v12  ;;  %2345 = vmatprep.mubr.msk.f32.mxu0 %vm2930_vm0, %v2931_v1 }
 0x8af   :  { %2551 = vmatpush3.bf16.msra.mxu1 %v3109_v47  ;;  %2561 = vmatprep.subr.bf16.mxu0 %v2929_v0 }
 0x8b0   :  { %2552 = vmatprep.subr.bf16.mxu1 %v2929_v0 }
 0x8b2   :  { %2563 = vmatpush3.bf16.msra.mxu0 %v3077_v17 }
 0x8b3   :  { %2554 = vmatpush3.bf16.msra.mxu1 %v3115_v52  ;;  %2564 = vmatprep.subr.bf16.mxu0 %v2929_v0 }
 0x8b4   :  { %2555 = vmatprep.subr.bf16.mxu1 %v2929_v0 }
 0x8b7   :  { %2557 = vmatpush3.bf16.msra.mxu1 %v3122_v57 }
 0x8b8   :  { %2576 = vmatprep.subr.bf16.mxu1 %v2929_v0 }
 0x97d   :  { %v950_v34 = vpop.f32.mrb[6].mxu1 }
 0x97e   :  { %v954_v35 = vadd.f32 %v950_v34, %v232_v33  ;;  %v2317_v36 = vpop.f32.mrb[7].mxu1 }
 0x980   :  { %2690 = vtanh.f32 %v954_v35  ;;  %v854_v37 = vpop.f32.mrb[12].mxu0  ;;  %v2035_v43 = vmul.f32 -1.442695, %v954_v35 }
 0x981   :  { %v855_v39 = vadd.f32 %v3166_v7, %v854_v37  ;;  %v2306_v40 = vpop.f32.mrb[13].mxu0 }
 0x983   :  { %2692 = vtanh.f32 %v855_v39  ;;  %v2033_v44 = vmul.f32 -1.442695, %v855_v39 }
 0x984   :  { %2694 = vpow2.f32 %v2035_v43 }
 0x985   :  { %2696 = vpow2.f32 %v2033_v44 }
 0x98a   :  { %v2691_v41 = vpop.eup %2690 }
 0x98b   :  { %964 = vrot.lane.b32.xlu1 %v2691_v41, %s2933_s18 }
 0x98d   :  { %v2693_v38 = vpop.eup %2692 }
 0x98e   :  { %867 = vrot.lane.b32.xlu0 %v2693_v38, %s2933_s18  ;;  %v2695_v60 = vpop.eup %2694 }
 0x98f   :  { %v958_v45 = vadd.f32 1.0, %v2695_v60  ;;  %v2697_v46 = vpop.eup %2696 }
 0x990   :  { %v861_v48 = vadd.f32 1.0, %v2697_v46 }
 0x991   :  { %2698 = vrcp.f32 %v958_v45 }
 0x992   :  { %2700 = vrcp.f32 %v861_v48 }
 0x99b   :  { %v2699_v49 = vpop.eup %2698 }
 0x99c   :  { %v2701_v53 = vpop.eup %2700  ;;  %v962_v56 = vmul.f32 %v2699_v49, %v3211_v19 }
 0x99d   :  { %v865_v4 = vmul.f32 %v2701_v53, %v3215_v22 }
 0x9fd   :  { %v965_v50 = vpop.permute.xlu1 %964 }
 0x9fe   :  { %v967_v51 = vmul.f32 %v2699_v49, %v965_v50 }
 0xa00   :  { %969 = vrot.lane.b32.xlu1 %v967_v51, %s2934_s3  ;;  %v868_v54 = vpop.permute.xlu0 %867 }
 0xa01   :  { %v870_v55 = vmul.f32 %v2701_v53, %v868_v54 }
 0xa03   :  { %872 = vrot.lane.b32.xlu0 %v870_v55, %s2934_s3 }
 0xa72   :  { %v970_v58 = vpop.permute.xlu1 %969 }
 0xa73   :  { %v3249_v59 = vadd.f32 %v970_v58, %v962_v56  ;;  %v242_v56 = vadd.f32 %v3134_v62, %v3094_v24 }
 0xa75   :  { %2702 = vtanh.f32 %v3249_v59  ;;  %v873_v61 = vpop.permute.xlu0 %872 }
 0xa76   :  { %v3253_v5 = vadd.f32 %v873_v61, %v865_v4 }
 0xa78   :  { %2704 = vtanh.f32 %v3253_v5 }
 0xa7f   :  { %v2703_v6 = vpop.eup %2702 }
 0xa80   :  { %975 = vrot.lane.b32.xlu1 %v2703_v6, %s2933_s18 }
 0xa82   :  { %v2705_v8 = vpop.eup %2704 }
 0xa83   :  { %878 = vrot.lane.b32.xlu0 %v2705_v8, %s2933_s18 }
 0xaf2   :  { %v976_v9 = vpop.permute.xlu1 %975 }
 0xaf3   :  { %v978_v10 = vmul.f32 %v2699_v49, %v976_v9 }
 0xaf5   :  { %980 = vrot.lane.b32.xlu0 %v978_v10, %s2934_s3  ;;  %v879_v11 = vpop.permute.xlu0 %878 }
 0xaf6   :  { %v881_v13 = vmul.f32 %v2701_v53, %v879_v11 }
 0xaf8   :  { %984 = vrot.lane.b32.xlu1 %v881_v13, %s2933_s18 }
 0xb67   :  { %v981_v14 = vpop.permute.xlu0 %980 }
 0xb68   :  { %2346 = vmatmul.mubr.msk.f32.vlgmr.msra.gmra.mrb[14].mxu0 %vm268_vm5, %v981_v14 }
 0xb69   :  { %2566 = vmatpush3.bf16.msra.mxu0 %v3104_v42  ;;  %2364 = vmatprep.mubr.msk.f32.mxu0 %vm2930_vm0, %v2931_v1 }
 0xb6a   :  { %2567 = vmatprep.subr.bf16.mxu0 %v2929_v0  ;;  %v985_v15 = vpop.permute.xlu1 %984 }
 0xb6b   :  { %v987_v16 = vsel %vm268_vm5, %v981_v14, %v985_v15 }
 0xb6c   :  { %2335 = vmatmul.mubr.msk.f32.vlgmr.msra.gmra.mrb[8].mxu1 %vm378_vm6, %v987_v16 }
 0xb6d   :  { %2569 = vmatpush3.bf16.msra.mxu0 %v3109_v47  ;;  %2578 = vmatpush3.bf16.msra.mxu1 %v3073_v12 }
 0xb6e   :  { %2570 = vmatprep.subr.bf16.mxu0 %v2929_v0  ;;  %2579 = vmatprep.subr.bf16.mxu1 %v2929_v0 }
 0xb6f   :  { %2375 = vmatprep.mubr.msk.f32.mxu1 %vm2930_vm0, %v2931_v1 }
 0xb71   :  { %2572 = vmatpush3.bf16.msra.mxu0 %v3115_v52  ;;  %2581 = vmatpush3.bf16.msra.mxu1 %v3077_v17 }
 0xb72   :  { %2573 = vmatprep.subr.bf16.mxu0 %v2929_v0  ;;  %2582 = vmatprep.subr.bf16.mxu1 %v2929_v0 }
 0xb75   :  { %2575 = vmatpush3.bf16.msra.mxu0 %v3122_v57 }
 0xb76   :  { %2594 = vmatprep.subr.bf16.mxu0 %v2929_v0 }
 0xc3b   :  { %v1153_v19 = vpop.f32.mrb[14].mxu0 }
 0xc3c   :  { %v1157_v20 = vadd.f32 %v1153_v19, %v237_v18  ;;  %v2347_v21 = vpop.f32.mrb[15].mxu0 }
 0xc3e   :  { %2706 = vtanh.f32 %v1157_v20  ;;  %v2039_v28 = vmul.f32 -1.442695, %v1157_v20 }
 0xc3f   :  { %v1057_v22 = vpop.f32.mrb[8].mxu1 }
 0xc40   :  { %v1058_v23 = vadd.f32 %v3166_v7, %v1057_v22  ;;  %v2336_v25 = vpop.f32.mrb[9].mxu1 }
 0xc42   :  { %2708 = vtanh.f32 %v1058_v23  ;;  %v2037_v29 = vmul.f32 -1.442695, %v1058_v23 }
 0xc43   :  { %2710 = vpow2.f32 %v2039_v28 }
 0xc44   :  { %2712 = vpow2.f32 %v2037_v29 }
 0xc48   :  { %v2707_v26 = vpop.eup %2706 }
 0xc49   :  { %1167 = vrot.lane.b32.xlu1 %v2707_v26, %s2933_s18 }
 0xc4c   :  { %v2709_v27 = vpop.eup %2708 }
 0xc4d   :  { %1070 = vrot.lane.b32.xlu0 %v2709_v27, %s2933_s18  ;;  %v2711_v63 = vpop.eup %2710 }
 0xc4e   :  { %v1161_v30 = vadd.f32 1.0, %v2711_v63  ;;  %v2713_v31 = vpop.eup %2712 }
 0xc4f   :  { %v1064_v32 = vadd.f32 1.0, %v2713_v31 }
 0xc50   :  { %2714 = vrcp.f32 %v1161_v30 }
 0xc51   :  { %2716 = vrcp.f32 %v1064_v32 }
 0xc5a   :  { %v2715_v33 = vpop.eup %2714 }
 0xc5b   :  { %v2717_v36 = vpop.eup %2716  ;;  %v1165_v40 = vmul.f32 %v2715_v33, %v3249_v59 }
 0xc5c   :  { %v1068_v43 = vmul.f32 %v2717_v36, %v3253_v5 }
 0xcbb   :  { %v1168_v34 = vpop.permute.xlu1 %1167 }
 0xcbc   :  { %v1170_v35 = vmul.f32 %v2715_v33, %v1168_v34 }
 0xcbe   :  { %1172 = vrot.lane.b32.xlu1 %v1170_v35, %s2934_s3 }
 0xcbf   :  { %v1071_v37 = vpop.permute.xlu0 %1070 }
 0xcc0   :  { %v1073_v39 = vmul.f32 %v2717_v36, %v1071_v37 }
 0xcc2   :  { %1075 = vrot.lane.b32.xlu0 %v1073_v39, %s2934_s3 }
 0xd30   :  { %v1173_v41 = vpop.permute.xlu1 %1172 }
 0xd31   :  { %v3287_v38 = vadd.f32 %v1173_v41, %v1165_v40 }
 0xd33   :  { %2718 = vtanh.f32 %v3287_v38 }
 0xd34   :  { %v1076_v44 = vpop.permute.xlu0 %1075 }
 0xd35   :  { %v3291_v60 = vadd.f32 %v1076_v44, %v1068_v43 }
 0xd37   :  { %2720 = vtanh.f32 %v3291_v60 }
 0xd3d   :  { %v2719_v45 = vpop.eup %2718 }
 0xd3e   :  { %1178 = vrot.lane.b32.xlu1 %v2719_v45, %s2933_s18 }
 0xd41   :  { %v2721_v46 = vpop.eup %2720 }
 0xd42   :  { %1081 = vrot.lane.b32.xlu0 %v2721_v46, %s2933_s18 }
 0xdb0   :  { %v1179_v48 = vpop.permute.xlu1 %1178 }
 0xdb1   :  { %v1181_v49 = vmul.f32 %v2715_v33, %v1179_v48 }
 0xdb3   :  { %1183 = vrot.lane.b32.xlu0 %v1181_v49, %s2934_s3 }
 0xdb4   :  { %v1082_v50 = vpop.permute.xlu0 %1081 }
 0xdb5   :  { %v1084_v51 = vmul.f32 %v2717_v36, %v1082_v50 }
 0xdb7   :  { %1187 = vrot.lane.b32.xlu1 %v1084_v51, %s2933_s18 }
 0xe25   :  { %v1184_v53 = vpop.permute.xlu0 %1183 }
 0xe26   :  { %2376 = vmatmul.mubr.msk.f32.vlgmr.msra.gmra.mrb[10].mxu1 %vm268_vm5, %v1184_v53 }
 0xe27   :  { %2584 = vmatpush3.bf16.msra.mxu1 %v3104_v42  ;;  %2394 = vmatprep.mubr.msk.f32.mxu1 %vm2930_vm0, %v2931_v1 }
 0xe28   :  { %2585 = vmatprep.subr.bf16.mxu1 %v2929_v0 }
 0xe29   :  { %v1188_v54 = vpop.permute.xlu1 %1187 }
 0xe2a   :  { %v1190_v55 = vsel %vm268_vm5, %v1184_v53, %v1188_v54 }
 0xe2b   :  { %2587 = vmatpush3.bf16.msra.mxu1 %v3109_v47  ;;  %2365 = vmatmul.mubr.msk.f32.vlgmr.msra.gmra.mrb[16].mxu0 %vm378_vm6, %v1190_v55 }
 0xe2c   :  { %2588 = vmatprep.subr.bf16.mxu1 %v2929_v0  ;;  %2596 = vmatpush3.bf16.msra.mxu0 %v3073_v12 }
 0xe2d   :  { %2405 = vmatprep.mubr.msk.f32.mxu0 %vm2930_vm0, %v2931_v1  ;;  %2597 = vmatprep.subr.bf16.mxu0 %v2929_v0 }
 0xe2f   :  { %2590 = vmatpush3.bf16.msra.mxu1 %v3115_v52 }
 0xe30   :  { %2591 = vmatprep.subr.bf16.mxu1 %v2929_v0  ;;  %2599 = vmatpush3.bf16.msra.mxu0 %v3077_v17 }
 0xe31   :  { %2600 = vmatprep.subr.bf16.mxu0 %v2929_v0 }
 0xe33   :  { %2593 = vmatpush3.bf16.msra.mxu1 %v3122_v57 }
 0xe34   :  { %2612 = vmatprep.subr.bf16.mxu1 %v2929_v0 }
 0xef9   :  { %v1356_v58 = vpop.f32.mrb[10].mxu1 }
 0xefa   :  { %v1360_v59 = vadd.f32 %v1356_v58, %v242_v56  ;;  %v2377_v4 = vpop.f32.mrb[11].mxu1 }
 0xefc   :  { %2722 = vtanh.f32 %v1360_v59  ;;  %v2043_v10 = vmul.f32 -1.442695, %v1360_v59 }
 0xefe   :  { %v1260_v61 = vpop.f32.mrb[16].mxu0 }
 0xeff   :  { %v1261_v5 = vadd.f32 %v3166_v7, %v1260_v61  ;;  %v2366_v6 = vpop.f32.mrb[17].mxu0 }
 0xf01   :  { %2724 = vtanh.f32 %v1261_v5  ;;  %v2041_v11 = vmul.f32 -1.442695, %v1261_v5 }
 0xf02   :  { %2726 = vpow2.f32 %v2043_v10 }
 0xf03   :  { %2728 = vpow2.f32 %v2041_v11 }
 0xf06   :  { %v2723_v8 = vpop.eup %2722 }
 0xf07   :  { %1370 = vrot.lane.b32.xlu1 %v2723_v8, %s2933_s18 }
 0xf0b   :  { %v2725_v9 = vpop.eup %2724 }
 0xf0c   :  { %1273 = vrot.lane.b32.xlu0 %v2725_v9, %s2933_s18  ;;  %v2727_v62 = vpop.eup %2726 }
 0xf0d   :  { %v1364_v13 = vadd.f32 1.0, %v2727_v62  ;;  %v2729_v14 = vpop.eup %2728 }
 0xf0e   :  { %v1267_v15 = vadd.f32 1.0, %v2729_v14 }
 0xf0f   :  { %2730 = vrcp.f32 %v1364_v13 }
 0xf10   :  { %2732 = vrcp.f32 %v1267_v15 }
 0xf19   :  { %v2731_v16 = vpop.eup %2730 }
 0xf1a   :  { %v2733_v20 = vpop.eup %2732  ;;  %v1368_v23 = vmul.f32 %v2731_v16, %v3287_v38 }
 0xf1b   :  { %v1271_v27 = vmul.f32 %v2733_v20, %v3291_v60 }
 0xf79   :  { %v1371_v18 = vpop.permute.xlu1 %1370 }
 0xf7a   :  { %v1373_v19 = vmul.f32 %v2731_v16, %v1371_v18 }
 0xf7c   :  { %1375 = vrot.lane.b32.xlu1 %v1373_v19, %s2934_s3 }
 0xf7e   :  { %v1274_v21 = vpop.permute.xlu0 %1273 }
 0xf7f   :  { %v1276_v22 = vmul.f32 %v2733_v20, %v1274_v21 }
 0xf81   :  { %1278 = vrot.lane.b32.xlu0 %v1276_v22, %s2934_s3 }
 0xfee   :  { %v1376_v25 = vpop.permute.xlu1 %1375 }
 0xfef   :  { %v3325_v26 = vadd.f32 %v1376_v25, %v1368_v23 }
 0xff1   :  { %2734 = vtanh.f32 %v3325_v26 }
 0xff3   :  { %v1279_v28 = vpop.permute.xlu0 %1278 }
 0xff4   :  { %v3329_v29 = vadd.f32 %v1279_v28, %v1271_v27 }
 0xff6   :  { %2736 = vtanh.f32 %v3329_v29 }
 0xffb   :  { %v2735_v63 = vpop.eup %2734 }
 0xffc   :  { %1381 = vrot.lane.b32.xlu1 %v2735_v63, %s2933_s18 }
0x1000   :  { %v2737_v30 = vpop.eup %2736 }
0x1001   :  { %1284 = vrot.lane.b32.xlu0 %v2737_v30, %s2933_s18 }
0x106e   :  { %v1382_v31 = vpop.permute.xlu1 %1381 }
0x106f   :  { %v1384_v32 = vmul.f32 %v2731_v16, %v1382_v31 }
0x1071   :  { %1386 = vrot.lane.b32.xlu0 %v1384_v32, %s2934_s3 }
0x1073   :  { %v1285_v33 = vpop.permute.xlu0 %1284 }
0x1074   :  { %v1287_v34 = vmul.f32 %v2733_v20, %v1285_v33 }
0x1076   :  { %1390 = vrot.lane.b32.xlu1 %v1287_v34, %s2933_s18 }
0x10e3   :  { %v1387_v35 = vpop.permute.xlu0 %1386 }
0x10e4   :  { %2406 = vmatmul.mubr.msk.f32.vlgmr.msra.gmra.mrb[18].mxu0 %vm268_vm5, %v1387_v35 }
0x10e5   :  { %2602 = vmatpush3.bf16.msra.mxu0 %v3104_v42  ;;  %2424 = vmatprep.mubr.msk.f32.mxu0 %vm2930_vm0, %v2931_v1 }
0x10e6   :  { %2603 = vmatprep.subr.bf16.mxu0 %v2929_v0 }
0x10e8   :  { %v1391_v36 = vpop.permute.xlu1 %1390 }
0x10e9   :  { %2605 = vmatpush3.bf16.msra.mxu0 %v3109_v47  ;;  %v1393_v37 = vsel %vm268_vm5, %v1387_v35, %v1391_v36 }
0x10ea   :  { %2606 = vmatprep.subr.bf16.mxu0 %v2929_v0  ;;  %2395 = vmatmul.mubr.msk.f32.vlgmr.msra.gmra.mrb[12].mxu1 %vm378_vm6, %v1393_v37 }
0x10eb   :  { %2614 = vmatpush3.bf16.msra.mxu1 %v3073_v12  ;;  %2435 = vmatprep.mubr.msk.f32.mxu1 %vm2930_vm0, %v2931_v1  ;;  %v247_v12 = vadd.f32 %v3094_v24, %v3140_v3 }
0x10ec   :  { %2615 = vmatprep.subr.bf16.mxu1 %v2929_v0 }
0x10ed   :  { %2608 = vmatpush3.bf16.msra.mxu0 %v3115_v52 }
0x10ee   :  { %2609 = vmatprep.subr.bf16.mxu0 %v2929_v0 }
0x10ef   :  { %2617 = vmatpush3.bf16.msra.mxu1 %v3077_v17 }
0x10f0   :  { %2618 = vmatprep.subr.bf16.mxu1 %v2929_v0 }
0x10f1   :  { %2611 = vmatpush3.bf16.msra.mxu0 %v3122_v57 }
0x10f2   :  { %2630 = vmatprep.subr.bf16.mxu0 %v2929_v0 }
0x11b7   :  { %v1559_v39 = vpop.f32.mrb[18].mxu0 }
0x11b8   :  { %v1563_v40 = vadd.f32 %v1559_v39, %v247_v12  ;;  %v2407_v41 = vpop.f32.mrb[19].mxu0 }
0x11ba   :  { %2738 = vtanh.f32 %v1563_v40  ;;  %v2047_v45 = vmul.f32 -1.442695, %v1563_v40 }
0x11bd   :  { %v1463_v38 = vpop.f32.mrb[12].mxu1 }
0x11be   :  { %v1464_v43 = vadd.f32 %v3166_v7, %v1463_v38  ;;  %v2396_v44 = vpop.f32.mrb[13].mxu1 }
0x11c0   :  { %2740 = vtanh.f32 %v1464_v43  ;;  %v2045_v46 = vmul.f32 -1.442695, %v1464_v43 }
0x11c1   :  { %2742 = vpow2.f32 %v2047_v45 }
0x11c2   :  { %2744 = vpow2.f32 %v2045_v46 }
0x11c4   :  { %v2739_v60 = vpop.eup %2738 }
0x11c5   :  { %1573 = vrot.lane.b32.xlu1 %v2739_v60, %s2933_s18 }
0x11ca   :  { %v2741_v17 = vpop.eup %2740 }
0x11cb   :  { %1476 = vrot.lane.b32.xlu0 %v2741_v17, %s2933_s18  ;;  %v2743_v3 = vpop.eup %2742 }
0x11cc   :  { %v1567_v48 = vadd.f32 1.0, %v2743_v3  ;;  %v2745_v49 = vpop.eup %2744 }
0x11cd   :  { %v1470_v50 = vadd.f32 1.0, %v2745_v49 }
0x11ce   :  { %2746 = vrcp.f32 %v1567_v48 }
0x11cf   :  { %2748 = vrcp.f32 %v1470_v50 }
0x11d8   :  { %v2747_v51 = vpop.eup %2746 }
0x11d9   :  { %v2749_v55 = vpop.eup %2748  ;;  %v1571_v59 = vmul.f32 %v2747_v51, %v3325_v26 }
0x11da   :  { %v1474_v5 = vmul.f32 %v2749_v55, %v3329_v29 }
0x1237   :  { %v1574_v53 = vpop.permute.xlu1 %1573 }
0x1238   :  { %v1576_v54 = vmul.f32 %v2747_v51, %v1574_v53 }
0x123a   :  { %1578 = vrot.lane.b32.xlu1 %v1576_v54, %s2934_s3 }
0x123d   :  { %v1477_v56 = vpop.permute.xlu0 %1476 }
0x123e   :  { %v1479_v58 = vmul.f32 %v2749_v55, %v1477_v56 }
0x1240   :  { %1481 = vrot.lane.b32.xlu0 %v1479_v58, %s2934_s3 }
0x12ac   :  { %v1579_v4 = vpop.permute.xlu1 %1578 }
0x12ad   :  { %v1581_v61 = vadd.f32 %v1579_v4, %v1571_v59 }
0x12af   :  { %2750 = vtanh.f32 %v1581_v61 }
0x12b2   :  { %v1482_v6 = vpop.permute.xlu0 %1481 }
0x12b3   :  { %v1484_v8 = vadd.f32 %v1482_v6, %v1474_v5  ;;  %v1899_v5 = vld [vmem:[#allocation10 + $0x10] sm:$0xff] }
0x12b5   :  { %2752 = vtanh.f32 %v1484_v8 }
0x12b9   :  { %v2751_v9 = vpop.eup %2750 }
0x12ba   :  { %1584 = vrot.lane.b32.xlu1 %v2751_v9, %s2933_s18 }
0x12bf   :  { %v2753_v10 = vpop.eup %2752 }
0x12c0   :  { %1487 = vrot.lane.b32.xlu0 %v2753_v10, %s2933_s18 }
0x132c   :  { %v1585_v11 = vpop.permute.xlu1 %1584 }
0x132d   :  { %v1587_v62 = vmul.f32 %v2747_v51, %v1585_v11 }
0x132f   :  { %1589 = vrot.lane.b32.xlu0 %v1587_v62, %s2934_s3 }
0x1332   :  { %v1488_v13 = vpop.permute.xlu0 %1487 }
0x1333   :  { %v1490_v14 = vmul.f32 %v2749_v55, %v1488_v13 }
0x1335   :  { %1593 = vrot.lane.b32.xlu1 %v1490_v14, %s2933_s18  ;;  %v2054_v14 = vld [vmem:[%s3424_s7] ss:$0 sm:$0xff]  ;;  %s2892_s7 = scalar_lea.vmem %s2002_s25, 128 }
0x1336   :  { %p2893_p12 = scmp.ne.s32.totalorder %s2002_s25, %s2892_s7  ;;  %p2898_p0 = scmp.lt.s32.totalorder %s2892_s7, %s2892_s7 }
0x1338   :  { %p2899_p1 = por %p2898_p0, %p2897_p13 }
0x133a   :  { %p2900_p2 = pnand %p2899_p1, %p2893_p12 }
0x13a1   :  { %v1590_v15 = vpop.permute.xlu0 %1589 }
0x13a2   :  { %2436 = vmatmul.mubr.msk.f32.vlgmr.msra.gmra.mrb[14].mxu1 %vm268_vm5, %v1590_v15 }
0x13a3   :  { %2620 = vmatpush3.bf16.msra.mxu1 %v3104_v42  ;;  %2454 = vmatprep.mubr.msk.f32.mxu1 %vm2930_vm0, %v2931_v1  ;;  %v252_v42 = vadd.f32 %v3138_v2, %v3094_v24 }
0x13a4   :  { %2621 = vmatprep.subr.bf16.mxu1 %v2929_v0 }
0x13a7   :  { %2623 = vmatpush3.bf16.msra.mxu1 %v3109_v47  ;;  %v1594_v16 = vpop.permute.xlu1 %1593 }
0x13a8   :  { %2624 = vmatprep.subr.bf16.mxu1 %v2929_v0  ;;  %v1596_v18 = vsel %vm268_vm5, %v1590_v15, %v1594_v16 }
0x13a9   :  { %2425 = vmatmul.mubr.msk.f32.vlgmr.msra.gmra.mrb[20].mxu0 %vm378_vm6, %v1596_v18 }
0x13aa   :  { %2465 = vmatprep.mubr.msk.f32.mxu0 %vm2930_vm0, %v2931_v1 }
0x13ab   :  { %2626 = vmatpush3.bf16.msra.mxu1 %v3115_v52 }
0x13ac   :  { %2627 = vmatprep.subr.bf16.mxu1 %v2929_v0 }
0x13af   :  { %2629 = vmatpush3.bf16.msra.mxu1 %v3122_v57 }
0x1475   :  { %v1762_v47 = vpop.f32.mrb[14].mxu1 }
0x1476   :  { %v1766_v19 = vadd.f32 %v1762_v47, %v252_v42  ;;  %v2437_v20 = vpop.f32.mrb[15].mxu1 }
0x1478   :  { %2754 = vtanh.f32 %v1766_v19  ;;  %v2051_v25 = vmul.f32 -1.442695, %v1766_v19 }
0x147c   :  { %v1666_v21 = vpop.f32.mrb[20].mxu0 }
0x147d   :  { %v1667_v22 = vadd.f32 %v3166_v7, %v1666_v21  ;;  %v2426_v23 = vpop.f32.mrb[21].mxu0 }
0x147f   :  { %2756 = vtanh.f32 %v1667_v22  ;;  %v2049_v57 = vmul.f32 -1.442695, %v1667_v22 }
0x1480   :  { %2758 = vpow2.f32 %v2051_v25 }
0x1481   :  { %2760 = vpow2.f32 %v2049_v57 }
0x1482   :  { %v2755_v52 = vpop.eup %2754 }
0x1483   :  { %1776 = vrot.lane.b32.xlu1 %v2755_v52, %s2933_s18 }
0x1489   :  { %v2757_v1 = vpop.eup %2756 }
0x148a   :  { %1679 = vrot.lane.b32.xlu0 %v2757_v1, %s2933_s18  ;;  %v2759_v24 = vpop.eup %2758 }
0x148b   :  { %v1770_v2 = vadd.f32 1.0, %v2759_v24  ;;  %v2761_v26 = vpop.eup %2760 }
0x148c   :  { %v1673_v27 = vadd.f32 1.0, %v2761_v26 }
0x148d   :  { %2762 = vrcp.f32 %v1770_v2 }
0x148e   :  { %2764 = vrcp.f32 %v1673_v27 }
0x1497   :  { %v2763_v28 = vpop.eup %2762 }
0x1498   :  { %v2765_v30 = vpop.eup %2764  ;;  %v1774_v33 = vmul.f32 %v2763_v28, %v1581_v61  ;;  %v1898_v61 = vld [vmem:[#allocation10 + $0x8] sm:$0xff] }
0x1499   :  { %v1677_v36 = vmul.f32 %v2765_v30, %v1484_v8  ;;  %v1900_v8 = vld [vmem:[#allocation10 + $0x18] sm:$0xff] }
0x149a   :  { %v2634_v9 = vpack.c.bf16 %v1900_v8, %v1899_v5 }
0x14f5   :  { %v1777_v29 = vpop.permute.xlu1 %1776 }
0x14f6   :  { %v1779_v63 = vmul.f32 %v2763_v28, %v1777_v29 }
0x14f8   :  { %1781 = vrot.lane.b32.xlu1 %v1779_v63, %s2934_s3 }
0x14fc   :  { %v1680_v31 = vpop.permute.xlu0 %1679 }
0x14fd   :  { %v1682_v32 = vmul.f32 %v2765_v30, %v1680_v31 }
0x14ff   :  { %1684 = vrot.lane.b32.xlu0 %v1682_v32, %s2934_s3 }
0x156a   :  { %v1782_v34 = vpop.permute.xlu1 %1781 }
0x156b   :  { %v1784_v35 = vadd.f32 %v1782_v34, %v1774_v33 }
0x156d   :  { %2766 = vtanh.f32 %v1784_v35 }
0x1571   :  { %v1685_v37 = vpop.permute.xlu0 %1684 }
0x1572   :  { %v1687_v12 = vadd.f32 %v1685_v37, %v1677_v36 }
0x1574   :  { %2768 = vtanh.f32 %v1687_v12 }
0x1577   :  { %v2767_v39 = vpop.eup %2766 }
0x1578   :  { %1787 = vrot.lane.b32.xlu1 %v2767_v39, %s2933_s18 }
0x157e   :  { %v2769_v40 = vpop.eup %2768 }
0x157f   :  { %1690 = vrot.lane.b32.xlu0 %v2769_v40, %s2933_s18 }
0x15ea   :  { %v1788_v41 = vpop.permute.xlu1 %1787 }
0x15eb   :  { %v1790_v38 = vmul.f32 %v2763_v28, %v1788_v41 }
0x15ed   :  { %1792 = vrot.lane.b32.xlu0 %v1790_v38, %s2934_s3 }
0x15f1   :  { %v1691_v43 = vpop.permute.xlu0 %1690 }
0x15f2   :  { %v1693_v44 = vmul.f32 %v2765_v30, %v1691_v43 }
0x15f4   :  { %1796 = vrot.lane.b32.xlu1 %v1693_v44, %s2933_s18 }
0x165f   :  { %v1793_v60 = vpop.permute.xlu0 %1792 }
0x1666   :  { %v1797_v17 = vpop.permute.xlu1 %1796 }
0x1667   :  { %v1799_v45 = vsel %vm268_vm5, %v1793_v60, %v1797_v17 }
0x1668   :  { %2455 = vmatmul.mubr.msk.f32.vlgmr.msra.gmra.mrb[16].mxu1 %vm378_vm6, %v1799_v45 }
0x173b   :  { %v1869_v46 = vpop.f32.mrb[16].mxu1 }
0x173c   :  { %v1870_v3 = vadd.f32 %v3166_v7, %v1869_v46  ;;  %v2456_v48 = vpop.f32.mrb[17].mxu1  ;;  %v1897_v7 = vld [vmem:[#allocation10] sm:$0xff] }
0x173d   :  { %v2631_v6 = vpack.c.bf16 %v1898_v61, %v1897_v7 }
0x173e   :  { %2770 = vtanh.f32 %v1870_v3  ;;  %v2053_v50 = vmul.f32 -1.442695, %v1870_v3 }
0x173f   :  { %2632 = vmatpush3.bf16.msra.mxu0 %v2631_v6 }
0x1740   :  { %2772 = vpow2.f32 %v2053_v50  ;;  %2633 = vmatprep.subr.bf16.mxu0 %v2929_v0 }
0x1743   :  { %2635 = vmatpush3.bf16.msra.mxu0 %v2634_v9 }
0x1748   :  { %v2771_v49 = vpop.eup %2770 }
0x1749   :  { %1882 = vrot.lane.b32.xlu0 %v2771_v49, %s2933_s18 }
0x174a   :  { %v2773_v51 = vpop.eup %2772 }
0x174b   :  { %v1876_v53 = vadd.f32 1.0, %v2773_v51 }
0x174d   :  { %2774 = vrcp.f32 %v1876_v53 }
0x1757   :  { %v2775_v54 = vpop.eup %2774 }
0x1758   :  { %v1880_v58 = vmul.f32 %v2775_v54, %v1687_v12 }
0x17bb   :  { %v1883_v55 = vpop.permute.xlu0 %1882 }
0x17bc   :  { %v1885_v56 = vmul.f32 %v2775_v54, %v1883_v55 }
0x17be   :  { %1887 = vrot.lane.b32.xlu1 %v1885_v56, %s2934_s3 }
0x1830   :  { %v1888_v59 = vpop.permute.xlu1 %1887 }
0x1831   :  { %v1890_v4 = vadd.f32 %v1888_v59, %v1880_v58 }
0x1833   :  { %2776 = vtanh.f32 %v1890_v4 }
0x183d   :  { %v2777_v10 = vpop.eup %2776 }
0x183e   :  { %1893 = vrot.lane.b32.xlu0 %v2777_v10, %s2933_s18 }
0x18b0   :  { %v1894_v11 = vpop.permute.xlu0 %1893 }
0x18b1   :  { %v1896_v62 = vmul.f32 %v2775_v54, %v1894_v11 }
0x18b3   :  { %1909 = vrot.lane.b32.xlu1 %v1896_v62, %s2934_s3 }
0x1925   :  { %v1910_v13 = vpop.permute.xlu1 %1909 }
0x1926   :  { %2466 = vmatmul.mubr.msk.f32.vlgmr.msra.gmra.mrb[22].mxu0 %vm268_vm5, %v1910_v13 }
0x19f9   :  { %v1979_v15 = vpop.f32.mrb[22].mxu0 }
0x19fa   :  { %v1980_v16 = vadd.f32 %v2054_v14, %v1979_v15  ;;  %v2467_v18 = vpop.f32.mrb[23].mxu0 }
0x19fc   :  { %1983 = vmax.xlane.f32.xlu0 %v1980_v16 }
0x1a89   :  { %v1984_v0 = vpop.xlane.xlu0 %1983 }
0x1a8a   :  { %v1985_v42 = vsub.f32 %v1980_v16, %v1984_v0 }
0x1a8c   :  { %v1986_v47 = vmul.f32 1.442695, %v1985_v42 }
0x1a8e   :  { %2778 = vpow2.f32 %v1986_v47 }
0x1a98   :  { %v2779_v19 = vpop.eup %2778 }
0x1a99   :  { %1988 = vadd.xlane.f32.xlu1 %v2779_v19 }
0x1b26   :  { %v1989_v20 = vpop.xlane.xlu1 %1988 }
0x1b27   :  { %2780 = vlog2.f32 %v1989_v20 }
0x1b31   :  { %v2781_v21 = vpop.eup %2780 }
0x1b32   :  { %v1991_v22 = vmul.f32 0.6931472, %v2781_v21 }
0x1b34   :  { %v1992_v23 = vadd.f32 %v1991_v22, %v1984_v0 }
0x1b36   :  { %v1993_v52 = vsub.f32 %v1980_v16, %v1992_v23 }
0x1b38   :  { %1994 = vst [vmem:[#allocation11] sm:$0xff] %v1993_v52 }
0x1b39   :  { %2903 = shalt.err (!%p2900_p2)
}
0x1b3a   :  { %s2904_s29 = scalar_lea.hbm %s3425_s8, 128 }
0x1b3b   :  { %p2905_p3 = scmp.ne.s32.totalorder %s3425_s8, %s2904_s29  ;;  %p2908_p4 = scmp.lt.u32.totalorder %s2904_s29, %s3425_s8 }
0x1b3d   :  { %p2910_p5 = pnand %p2908_p4, %p2905_p3 }
0x1b3f   :  { %2913 = shalt.err (!%p2910_p5)
}
0x1b40   :  { %2004 = dma.vmem_to_hbm [thread:$0]  %s2002_s25, 128, %s3425_s8, [#allocation4]  }
0x1b41   :  { %2920 = dma.done.wait [#allocation4], 128  }
0x1b42   :  { %2921 = vsyncadd [#allocation4], 4294967168 }
0x1b43   :  { %2008 = vsyncpa [#allocation3], 1 }
0x1b44   :  { %2009 = vsyncpa [#allocation6], 1 }
0x1b45   :  { %2010 = vsyncpa [#allocation9], 1 }
0x1b46   :  { %2011 = vsyncpa [#allocation4], 1 }

</bundles_post_ra>
